<compile_context>
chip_gen: v5e
topology: v5e:2x2
jax: 0.10.0
libtpu: 0.0.40
codegen_flags: <defaults>
</compile_context>

<pallas_src>
import math
import functools

import jax
import jax.numpy as jnp
from jax.experimental import pallas as pl
from jax.experimental.pallas import tpu as pltpu

D_MODEL = 32
NUM_HEAD = 4
HEAD_SIZE = D_MODEL // NUM_HEAD
CTX_LENGTH = 8
DROP_OUT = 0.0          # eval-mode dropout == identity (no-op in kernel)
LN_EPS = 1e-5
NEG_BIG = -1e30         # finite additive-mask value (avoids -inf -> NaN rows)

_HIGHEST = jax.lax.Precision.HIGHEST


def _layer_norm(v, gamma, beta):
    mu = jnp.mean(v, axis=-1, keepdims=True)
    var = jnp.mean((v - mu) ** 2, axis=-1, keepdims=True)
    return (v - mu) * jax.lax.rsqrt(var + LN_EPS) * gamma + beta


def transformer_block_kernel(
    x_ref,        # (N, D)          flattened batch*seq rows, N = B*T
    params_ref,   # (4*D+8, 128)    packed parameters (see fuse_and_pack_params)
    bias_ref,     # (H*N, H*N)      additive attention mask (0 / -1e30)
    hsel_ref,     # (H*N, D)        0/1 head-column selector per stacked row block
    y_ref,        # (N, D)
    *, num_head,
):
    f32 = jnp.float32
    x = x_ref[...].astype(f32)
    N, D = x.shape
    H = num_head

    # ---- unpack parameters (static, 8-aligned slices of the packed buffer) ----
    w1   = params_ref[0:D, :]                          # (D, 4D)
    vecs = params_ref[D:D + 8, :]                      # (8, 128) tile of vectors
    b1   = vecs[0]                                     # (4D,)
    ln1g = vecs[1, 0:D]
    ln1b = vecs[2, 0:D]
    ln2g = vecs[3, 0:D]
    ln2b = vecs[4, 0:D]
    bo   = vecs[5, 0:D]
    b2   = vecs[6, 0:D]
    w2t  = params_ref[D + 8:2 * D + 8, :]              # (D, 4D) == W2^T
    wqkv = params_ref[2 * D + 8:3 * D + 8, 0:3 * D]    # (D, 3D) [Wq*scale|Wk|Wv]
    wo   = params_ref[3 * D + 8:4 * D + 8, 0:D]        # (D, D)

    # ---- LayerNorm 1 + fused QKV projection (one MXU push) ----
    xn1 = _layer_norm(x, ln1g, ln1b)
    qkv = jnp.dot(xn1, wqkv, precision=_HIGHEST, preferred_element_type=f32)
    q = qkv[:, 0:D]
    k = qkv[:, D:2 * D]
    v = qkv[:, 2 * D:3 * D]

    # ---- head-batched attention: all heads & batches in ONE score matmul ----
    # Rows are replicated per head block; K/V rows keep only their block's head
    # columns, so the full-D contraction reduces to the per-head dot product.
    hsel = hsel_ref[...]
    q_s = jnp.concatenate([q] * H, axis=0)             # (H*N, D)
    k_s = jnp.concatenate([k] * H, axis=0) * hsel      # (H*N, D), head-masked
    v_s = jnp.concatenate([v] * H, axis=0) * hsel      # (H*N, D), head-masked

    s = jax.lax.dot_general(q_s, k_s, (((1,), (1,)), ((), ())),
                            precision=_HIGHEST, preferred_element_type=f32)
    s = s + bias_ref[...]                              # -1e30 on masked entries
    s = s - jnp.max(s, axis=-1, keepdims=True)
    p = jnp.exp(s)
    p = p / jnp.sum(p, axis=-1, keepdims=True)         # exact divide
    o_s = jnp.dot(p, v_s, precision=_HIGHEST, preferred_element_type=f32)

    # Each row block is nonzero only in its own head's columns -> summing the
    # H row blocks reconstructs the lane-concatenation of head outputs.
    attn = o_s[0:N, :]
    for h in range(1, H):
        attn = attn + o_s[h * N:(h + 1) * N, :]
    attn = jnp.dot(attn, wo, precision=_HIGHEST, preferred_element_type=f32) + bo
    # dropout (p=0 / eval) -> identity

    x_w = x + attn                                      # residual 1

    # ---- LayerNorm 2 + FFN: Linear(D,4D) -> ReLU -> Linear(4D,D) ----
    xn2 = _layer_norm(x_w, ln2g, ln2b)
    h1 = jnp.dot(xn2, w1, precision=_HIGHEST, preferred_element_type=f32) + b1
    h1 = jnp.maximum(h1, 0.0)
    ff = jax.lax.dot_general(h1, w2t, (((1,), (1,)), ((), ())),
                             precision=_HIGHEST, preferred_element_type=f32) + b2
    # dropout (p=0 / eval) -> identity

    y_ref[...] = (x_w + ff).astype(y_ref.dtype)         # residual 2


@jax.jit
def transformer_block(x, packed_params):
    B, T, D = x.shape
    assert D == D_MODEL and T <= CTX_LENGTH
    N = B * T
    HN = NUM_HEAD * N
    x2d = x.reshape(N, D)

    # Precomputed outside the kernel (constant-folded by XLA): additive bias
    # combining (same head block) & (same batch) & causal, and the 0/1 head
    # column selector for the stacked K/V rows.
    r = jnp.arange(HN, dtype=jnp.int32)
    rh = r // N                    # head block of each stacked row
    rn = r % N                     # flattened (batch, time) index
    rb = rn // T
    rt = rn % T
    allowed = ((rh[:, None] == rh[None, :])
               & (rb[:, None] == rb[None, :])
               & (rt[:, None] >= rt[None, :]))
    attn_bias = jnp.where(allowed, 0.0, NEG_BIG).astype(jnp.float32)       # (HN, HN)
    col_head = jnp.arange(D_MODEL, dtype=jnp.int32) // HEAD_SIZE
    head_sel = (rh[:, None] == col_head[None, :]).astype(jnp.float32)      # (HN, D)

    kernel = functools.partial(transformer_block_kernel, num_head=NUM_HEAD)
    vmem = pl.BlockSpec(memory_space=pltpu.MemorySpace.VMEM)
    # Single invocation: the whole problem (~150 KB) is resident in VMEM and
    # every operand is DMA'd exactly once (4 input DMAs total).
    # TODO(synk): for large B, switch to a grid over batches with
    # dimension_semantics=("parallel",) (per-batch (T,T) scores keep FLOPs and
    # VMEM linear in B and use both TensorCores on v7x), and cast MXU operands
    # to bf16 on v6e/v7x while keeping f32 accumulation.
    y2d = pl.pallas_call(
        kernel,
        out_shape=jax.ShapeDtypeStruct((N, D), x.dtype),
        in_specs=[vmem, vmem, vmem, vmem],
        out_specs=vmem,
    )(x2d, packed_params, attn_bias, head_sel)
    return y2d.reshape(B, T, D)


def init_params(key):
    """Deterministic parameter init (shapes from the PyTorch module)."""
    ks = jax.random.split(key, 10)
    D = D_MODEL
    s = lambda k, shp, scale: (scale * jax.random.normal(k, shp)).astype(jnp.float32)
    ln1_g = jnp.ones((1, D), jnp.float32)
    ln1_b = jnp.zeros((1, D), jnp.float32)
    # per-head Wq/Wk/Wv (D_MODEL -> HEAD_SIZE, no bias), stacked along out dim
    wq = s(ks[0], (D, NUM_HEAD * HEAD_SIZE), 0.1)
    wk = s(ks[1], (D, NUM_HEAD * HEAD_SIZE), 0.1)
    wv = s(ks[2], (D, NUM_HEAD * HEAD_SIZE), 0.1)
    wo = s(ks[3], (D, D), 0.1)
    bo = s(ks[4], (1, D), 0.01)
    ln2_g = jnp.ones((1, D), jnp.float32)
    ln2_b = jnp.zeros((1, D), jnp.float32)
    w1 = s(ks[5], (D, 4 * D), 0.1)
    b1 = s(ks[6], (1, 4 * D), 0.01)
    w2 = s(ks[7], (4 * D, D), 0.1)
    b2 = s(ks[8], (1, D), 0.01)
    return (ln1_g, ln1_b, wq, wk, wv, wo, bo, ln2_g, ln2_b, w1, b1, w2, b2)


def fuse_and_pack_params(params):
    """One-time transform: fuse QKV, fold the 1/sqrt(hs) scale into Wq, store
    W2 transposed, and pack everything into one lane-dense (4*D+8, 128) buffer.

    Row layout (D = 32):
      [0 , D )      W1                (D, 4D)
      [D , D+8)     vector rows: b1 | ln1_g | ln1_b | ln2_g | ln2_b | bo | b2 | 0
      [D+8 , 2D+8)  W2^T              (D, 4D)
      [2D+8, 3D+8)  [Wq*scale|Wk|Wv]  (D, 3D)   in cols [0, 3D)
      [3D+8, 4D+8)  Wo                (D, D)    in cols [0, D)
    """
    (ln1_g, ln1_b, wq, wk, wv, wo, bo, ln2_g, ln2_b, w1, b1, w2, b2) = params
    D = D_MODEL
    scale = 1.0 / math.sqrt(HEAD_SIZE)
    wqkv = jnp.concatenate([wq * scale, wk, wv], axis=-1)   # (D, 3D)

    vecs = jnp.zeros((8, 4 * D), jnp.float32)
    vecs = vecs.at[0, :].set(b1[0])
    vecs = vecs.at[1, 0:D].set(ln1_g[0])
    vecs = vecs.at[2, 0:D].set(ln1_b[0])
    vecs = vecs.at[3, 0:D].set(ln2_g[0])
    vecs = vecs.at[4, 0:D].set(ln2_b[0])
    vecs = vecs.at[5, 0:D].set(bo[0])
    vecs = vecs.at[6, 0:D].set(b2[0])

    packed = jnp.zeros((4 * D + 8, 4 * D), jnp.float32)
    packed = packed.at[0:D, :].set(w1)
    packed = packed.at[D:D + 8, :].set(vecs)
    packed = packed.at[D + 8:2 * D + 8, :].set(w2.T)
    packed = packed.at[2 * D + 8:3 * D + 8, 0:3 * D].set(wqkv)
    packed = packed.at[3 * D + 8:4 * D + 8, 0:D].set(wo)
    return packed


def reference(x, params):
    """Pure-JAX reference of the PyTorch forward (eval mode), unfused params."""
    (ln1_g, ln1_b, wq, wk, wv, wo, bo, ln2_g, ln2_b, w1, b1, w2, b2) = params
    mm = lambda a, b: jnp.matmul(a, b, precision=_HIGHEST)

    def ln(v, g, b):
        mu = jnp.mean(v, -1, keepdims=True)
        var = jnp.mean((v - mu) ** 2, -1, keepdims=True)
        return (v - mu) / jnp.sqrt(var + LN_EPS) * g[0] + b[0]

    xn1 = ln(x, ln1_g, ln1_b)
    q, k, v = mm(xn1, wq), mm(xn1, wk), mm(xn1, wv)
    T = x.shape[1]
    mask = jnp.tril(jnp.ones((T, T), bool))
    outs = []
    for h in range(NUM_HEAD):
        lo, hi = h * HEAD_SIZE, (h + 1) * HEAD_SIZE
        sc = mm(q[..., lo:hi], jnp.swapaxes(k[..., lo:hi], -1, -2)) / math.sqrt(HEAD_SIZE)
        sc = jnp.where(mask, sc, -jnp.inf)
        p = jax.nn.softmax(sc, axis=-1)
        outs.append(mm(p, v[..., lo:hi]))
    attn = mm(jnp.concatenate(outs, -1), wo) + bo[0]
    xw = x + attn
    xn2 = ln(xw, ln2_g, ln2_b)
    ff = mm(jnp.maximum(mm(xn2, w1) + b1[0], 0.0), w2) + b2[0]
    return xw + ff


if __name__ == "__main__":
    key = jax.random.PRNGKey(0)
    kx, kp = jax.random.split(key)
    B, T = 2, CTX_LENGTH
    x = jax.random.normal(kx, (B, T, D_MODEL), dtype=jnp.float32)
    params = init_params(kp)
    packed = fuse_and_pack_params(params)     # one-time parameter transform

    y = transformer_block(x, packed)
    y = jax.block_until_ready(y)

    y_expected = reference(x, params)
    assert y.shape == (B, T, D_MODEL)
    assert jnp.allclose(y, y_expected, atol=1e-4, rtol=1e-4), "mismatch vs reference"
    print("KERNEL_OK")
</pallas_src>

<mosaic_0001>
module attributes {stable_mosaic.version = 11 : i64} {
  func.func @transformer_block_kernel(%arg0: memref<16x32xf32, #tpu.memory_space<vmem>>, %arg1: memref<136x128xf32, #tpu.memory_space<vmem>>, %arg2: memref<64x64xf32, #tpu.memory_space<vmem>>, %arg3: memref<64x32xf32, #tpu.memory_space<vmem>>, %arg4: memref<16x32xf32, #tpu.memory_space<vmem>>) attributes {dimension_semantics = [], scalar_prefetch = 0 : i64, scratch_operands = 0 : i64, tpu.core_type = #tpu.core_type<tc>} {
    %c0 = arith.constant 0 : index
    %c0_0 = arith.constant 0 : index
    %0 = vector.load %arg0[%c0, %c0_0] : memref<16x32xf32, #tpu.memory_space<vmem>>, vector<16x32xf32>
    %c0_1 = arith.constant 0 : index
    %c0_2 = arith.constant 0 : index
    %1 = vector.load %arg1[%c0_1, %c0_2] : memref<136x128xf32, #tpu.memory_space<vmem>>, vector<32x128xf32>
    %c32 = arith.constant 32 : index
    %c0_3 = arith.constant 0 : index
    %2 = vector.load %arg1[%c32, %c0_3] : memref<136x128xf32, #tpu.memory_space<vmem>>, vector<8x128xf32>
    %3 = vector.extract_strided_slice %2 {offsets = [0, 0], sizes = [1, 128], strides = [1, 1]} : vector<8x128xf32> to vector<1x128xf32>
    %4 = vector.shape_cast %3 : vector<1x128xf32> to vector<128xf32>
    %5 = vector.extract_strided_slice %2 {offsets = [1, 0], sizes = [1, 32], strides = [1, 1]} : vector<8x128xf32> to vector<1x32xf32>
    %6 = vector.shape_cast %5 : vector<1x32xf32> to vector<32xf32>
    %7 = vector.extract_strided_slice %2 {offsets = [2, 0], sizes = [1, 32], strides = [1, 1]} : vector<8x128xf32> to vector<1x32xf32>
    %8 = vector.shape_cast %7 : vector<1x32xf32> to vector<32xf32>
    %9 = vector.extract_strided_slice %2 {offsets = [3, 0], sizes = [1, 32], strides = [1, 1]} : vector<8x128xf32> to vector<1x32xf32>
    %10 = vector.shape_cast %9 : vector<1x32xf32> to vector<32xf32>
    %11 = vector.extract_strided_slice %2 {offsets = [4, 0], sizes = [1, 32], strides = [1, 1]} : vector<8x128xf32> to vector<1x32xf32>
    %12 = vector.shape_cast %11 : vector<1x32xf32> to vector<32xf32>
    %13 = vector.extract_strided_slice %2 {offsets = [5, 0], sizes = [1, 32], strides = [1, 1]} : vector<8x128xf32> to vector<1x32xf32>
    %14 = vector.shape_cast %13 : vector<1x32xf32> to vector<32xf32>
    %15 = vector.extract_strided_slice %2 {offsets = [6, 0], sizes = [1, 32], strides = [1, 1]} : vector<8x128xf32> to vector<1x32xf32>
    %16 = vector.shape_cast %15 : vector<1x32xf32> to vector<32xf32>
    %c40 = arith.constant 40 : index
    %c0_4 = arith.constant 0 : index
    %17 = vector.load %arg1[%c40, %c0_4] : memref<136x128xf32, #tpu.memory_space<vmem>>, vector<32x128xf32>
    %c72 = arith.constant 72 : index
    %c0_5 = arith.constant 0 : index
    %18 = vector.load %arg1[%c72, %c0_5] : memref<136x128xf32, #tpu.memory_space<vmem>>, vector<32x96xf32>
    %c104 = arith.constant 104 : index
    %c0_6 = arith.constant 0 : index
    %19 = vector.load %arg1[%c104, %c0_6] : memref<136x128xf32, #tpu.memory_space<vmem>>, vector<32x32xf32>
    %cst = arith.constant dense<0.000000e+00> : vector<16xf32>
    %20 = vector.multi_reduction <add>, %0, %cst [1] : vector<16x32xf32> to vector<16xf32>
    %21 = vector.shape_cast %20 : vector<16xf32> to vector<16x1xf32>
    %cst_7 = arith.constant 3.200000e+01 : f32
    %22 = vector.broadcast %cst_7 : f32 to vector<16x1xf32>
    %23 = arith.divf %21, %22 : vector<16x1xf32>
    %24 = vector.broadcast %23 : vector<16x1xf32> to vector<16x32xf32>
    %25 = arith.subf %0, %24 : vector<16x32xf32>
    %26 = arith.mulf %25, %25 : vector<16x32xf32>
    %cst_8 = arith.constant dense<0.000000e+00> : vector<16xf32>
    %27 = vector.multi_reduction <add>, %26, %cst_8 [1] : vector<16x32xf32> to vector<16xf32>
    %28 = vector.shape_cast %27 : vector<16xf32> to vector<16x1xf32>
    %cst_9 = arith.constant 3.200000e+01 : f32
    %29 = vector.broadcast %cst_9 : f32 to vector<16x1xf32>
    %30 = arith.divf %28, %29 : vector<16x1xf32>
    %31 = vector.broadcast %23 : vector<16x1xf32> to vector<16x32xf32>
    %32 = arith.subf %0, %31 : vector<16x32xf32>
    %cst_10 = arith.constant 9.99999974E-6 : f32
    %33 = vector.broadcast %cst_10 : f32 to vector<16x1xf32>
    %34 = arith.addf %30, %33 : vector<16x1xf32>
    %35 = math.rsqrt %34 : vector<16x1xf32>
    %36 = vector.broadcast %35 : vector<16x1xf32> to vector<16x32xf32>
    %37 = arith.mulf %32, %36 : vector<16x32xf32>
    %38 = vector.shape_cast %6 : vector<32xf32> to vector<1x32xf32>
    %39 = vector.broadcast %38 : vector<1x32xf32> to vector<16x32xf32>
    %40 = arith.mulf %37, %39 : vector<16x32xf32>
    %41 = vector.shape_cast %8 : vector<32xf32> to vector<1x32xf32>
    %42 = vector.broadcast %41 : vector<1x32xf32> to vector<16x32xf32>
    %43 = arith.addf %40, %42 : vector<16x32xf32>
    %cst_11 = arith.constant dense<0.000000e+00> : vector<16x96xf32>
    %44 = tpu.matmul %43, %18, %cst_11 {dimension_numbers = #tpu.dot_dimension_numbers<[1], [0], [0], [1], [0, 0, 1, 1], [], []>, precision = #tpu.contract_precision<fp32>} : vector<16x32xf32>, vector<32x96xf32>, vector<16x96xf32> -> vector<16x96xf32>
    %45 = vector.extract_strided_slice %44 {offsets = [0, 0], sizes = [16, 32], strides = [1, 1]} : vector<16x96xf32> to vector<16x32xf32>
    %46 = vector.extract_strided_slice %44 {offsets = [0, 32], sizes = [16, 32], strides = [1, 1]} : vector<16x96xf32> to vector<16x32xf32>
    %47 = vector.extract_strided_slice %44 {offsets = [0, 64], sizes = [16, 32], strides = [1, 1]} : vector<16x96xf32> to vector<16x32xf32>
    %c0_12 = arith.constant 0 : index
    %c0_13 = arith.constant 0 : index
    %48 = vector.load %arg3[%c0_12, %c0_13] : memref<64x32xf32, #tpu.memory_space<vmem>>, vector<64x32xf32>
    %49 = tpu.concatenate %45, %45, %45, %45 in 0 : vector<16x32xf32>, vector<16x32xf32>, vector<16x32xf32>, vector<16x32xf32> -> vector<64x32xf32>
    %50 = tpu.concatenate %46, %46, %46, %46 in 0 : vector<16x32xf32>, vector<16x32xf32>, vector<16x32xf32>, vector<16x32xf32> -> vector<64x32xf32>
    %51 = arith.mulf %50, %48 : vector<64x32xf32>
    %52 = tpu.concatenate %47, %47, %47, %47 in 0 : vector<16x32xf32>, vector<16x32xf32>, vector<16x32xf32>, vector<16x32xf32> -> vector<64x32xf32>
    %53 = arith.mulf %52, %48 : vector<64x32xf32>
    %cst_14 = arith.constant dense<0.000000e+00> : vector<64x64xf32>
    %54 = tpu.matmul %49, %51, %cst_14 {dimension_numbers = #tpu.dot_dimension_numbers<[1], [1], [0], [0], [0, 0, 1, 0], [], []>, precision = #tpu.contract_precision<fp32>} : vector<64x32xf32>, vector<64x32xf32>, vector<64x64xf32> -> vector<64x64xf32>
    %c0_15 = arith.constant 0 : index
    %c0_16 = arith.constant 0 : index
    %55 = vector.load %arg2[%c0_15, %c0_16] : memref<64x64xf32, #tpu.memory_space<vmem>>, vector<64x64xf32>
    %56 = arith.addf %54, %55 : vector<64x64xf32>
    %cst_17 = arith.constant dense<0xFF800000> : vector<64xf32>
    %57 = vector.multi_reduction <maximumf>, %56, %cst_17 [1] : vector<64x64xf32> to vector<64xf32>
    %58 = vector.shape_cast %57 : vector<64xf32> to vector<64x1xf32>
    %59 = vector.broadcast %58 : vector<64x1xf32> to vector<64x64xf32>
    %60 = arith.subf %56, %59 : vector<64x64xf32>
    %61 = math.exp %60 : vector<64x64xf32>
    %cst_18 = arith.constant dense<0.000000e+00> : vector<64xf32>
    %62 = vector.multi_reduction <add>, %61, %cst_18 [1] : vector<64x64xf32> to vector<64xf32>
    %63 = vector.shape_cast %62 : vector<64xf32> to vector<64x1xf32>
    %64 = vector.broadcast %63 : vector<64x1xf32> to vector<64x64xf32>
    %65 = arith.divf %61, %64 : vector<64x64xf32>
    %cst_19 = arith.constant dense<0.000000e+00> : vector<64x32xf32>
    %66 = tpu.matmul %65, %53, %cst_19 {dimension_numbers = #tpu.dot_dimension_numbers<[1], [0], [0], [1], [0, 0, 1, 1], [], []>, precision = #tpu.contract_precision<fp32>} : vector<64x64xf32>, vector<64x32xf32>, vector<64x32xf32> -> vector<64x32xf32>
    %67 = vector.extract_strided_slice %66 {offsets = [0, 0], sizes = [16, 32], strides = [1, 1]} : vector<64x32xf32> to vector<16x32xf32>
    %68 = vector.extract_strided_slice %66 {offsets = [16, 0], sizes = [16, 32], strides = [1, 1]} : vector<64x32xf32> to vector<16x32xf32>
    %69 = arith.addf %67, %68 : vector<16x32xf32>
    %70 = vector.extract_strided_slice %66 {offsets = [32, 0], sizes = [16, 32], strides = [1, 1]} : vector<64x32xf32> to vector<16x32xf32>
    %71 = arith.addf %69, %70 : vector<16x32xf32>
    %72 = vector.extract_strided_slice %66 {offsets = [48, 0], sizes = [16, 32], strides = [1, 1]} : vector<64x32xf32> to vector<16x32xf32>
    %73 = arith.addf %71, %72 : vector<16x32xf32>
    %cst_20 = arith.constant dense<0.000000e+00> : vector<16x32xf32>
    %74 = tpu.matmul %73, %19, %cst_20 {dimension_numbers = #tpu.dot_dimension_numbers<[1], [0], [0], [1], [0, 0, 1, 1], [], []>, precision = #tpu.contract_precision<fp32>} : vector<16x32xf32>, vector<32x32xf32>, vector<16x32xf32> -> vector<16x32xf32>
    %75 = vector.shape_cast %14 : vector<32xf32> to vector<1x32xf32>
    %76 = vector.broadcast %75 : vector<1x32xf32> to vector<16x32xf32>
    %77 = arith.addf %74, %76 : vector<16x32xf32>
    %78 = arith.addf %0, %77 : vector<16x32xf32>
    %cst_21 = arith.constant dense<0.000000e+00> : vector<16xf32>
    %79 = vector.multi_reduction <add>, %78, %cst_21 [1] : vector<16x32xf32> to vector<16xf32>
    %80 = vector.shape_cast %79 : vector<16xf32> to vector<16x1xf32>
    %cst_22 = arith.constant 3.200000e+01 : f32
    %81 = vector.broadcast %cst_22 : f32 to vector<16x1xf32>
    %82 = arith.divf %80, %81 : vector<16x1xf32>
    %83 = vector.broadcast %82 : vector<16x1xf32> to vector<16x32xf32>
    %84 = arith.subf %78, %83 : vector<16x32xf32>
    %85 = arith.mulf %84, %84 : vector<16x32xf32>
    %cst_23 = arith.constant dense<0.000000e+00> : vector<16xf32>
    %86 = vector.multi_reduction <add>, %85, %cst_23 [1] : vector<16x32xf32> to vector<16xf32>
    %87 = vector.shape_cast %86 : vector<16xf32> to vector<16x1xf32>
    %cst_24 = arith.constant 3.200000e+01 : f32
    %88 = vector.broadcast %cst_24 : f32 to vector<16x1xf32>
    %89 = arith.divf %87, %88 : vector<16x1xf32>
    %90 = vector.broadcast %82 : vector<16x1xf32> to vector<16x32xf32>
    %91 = arith.subf %78, %90 : vector<16x32xf32>
    %cst_25 = arith.constant 9.99999974E-6 : f32
    %92 = vector.broadcast %cst_25 : f32 to vector<16x1xf32>
    %93 = arith.addf %89, %92 : vector<16x1xf32>
    %94 = math.rsqrt %93 : vector<16x1xf32>
    %95 = vector.broadcast %94 : vector<16x1xf32> to vector<16x32xf32>
    %96 = arith.mulf %91, %95 : vector<16x32xf32>
    %97 = vector.shape_cast %10 : vector<32xf32> to vector<1x32xf32>
    %98 = vector.broadcast %97 : vector<1x32xf32> to vector<16x32xf32>
    %99 = arith.mulf %96, %98 : vector<16x32xf32>
    %100 = vector.shape_cast %12 : vector<32xf32> to vector<1x32xf32>
    %101 = vector.broadcast %100 : vector<1x32xf32> to vector<16x32xf32>
    %102 = arith.addf %99, %101 : vector<16x32xf32>
    %cst_26 = arith.constant dense<0.000000e+00> : vector<16x128xf32>
    %103 = tpu.matmul %102, %1, %cst_26 {dimension_numbers = #tpu.dot_dimension_numbers<[1], [0], [0], [1], [0, 0, 1, 1], [], []>, precision = #tpu.contract_precision<fp32>} : vector<16x32xf32>, vector<32x128xf32>, vector<16x128xf32> -> vector<16x128xf32>
    %104 = vector.shape_cast %4 : vector<128xf32> to vector<1x128xf32>
    %105 = vector.broadcast %104 : vector<1x128xf32> to vector<16x128xf32>
    %106 = arith.addf %103, %105 : vector<16x128xf32>
    %cst_27 = arith.constant 0.000000e+00 : f32
    %107 = vector.broadcast %cst_27 : f32 to vector<16x128xf32>
    %108 = arith.maximumf %106, %107 : vector<16x128xf32>
    %cst_28 = arith.constant dense<0.000000e+00> : vector<16x32xf32>
    %109 = tpu.matmul %108, %17, %cst_28 {dimension_numbers = #tpu.dot_dimension_numbers<[1], [1], [0], [0], [0, 0, 1, 0], [], []>, precision = #tpu.contract_precision<fp32>} : vector<16x128xf32>, vector<32x128xf32>, vector<16x32xf32> -> vector<16x32xf32>
    %110 = vector.shape_cast %16 : vector<32xf32> to vector<1x32xf32>
    %111 = vector.broadcast %110 : vector<1x32xf32> to vector<16x32xf32>
    %112 = arith.addf %109, %111 : vector<16x32xf32>
    %113 = arith.addf %78, %112 : vector<16x32xf32>
    %c0_29 = arith.constant 0 : index
    %c0_30 = arith.constant 0 : index
    %114 = vector.load %arg4[%c0_29, %c0_30] : memref<16x32xf32, #tpu.memory_space<vmem>>, vector<16x32xf32>
    tpu.vector_store %arg4[%c0_29, %c0_30], %113 {strides = array<i32>} : memref<16x32xf32, #tpu.memory_space<vmem>>, vector<16x32xf32>,
    return
  }
}

</mosaic_0001>

<bundles_post_ra>
// kernel: transformer_block.1
= control target key start
LH: loop header
LB: loop body
LE: loop exit
PB: predicated region body
PF: predicated region fallthrough
CT: control target
= control target key end

     0   :  { %9 = vsyncpa [#allocation3], 0  ;;  %s3229_s0 = inlined_call_operand.hbm [shape: f32[16,32], index: 0, kind: input, shape index: {}]   ;;  %s3230_s1 = inlined_call_operand.vmem [shape: f32[136,128], index: 1, kind: input, shape index: {}]   ;;  %s3231_s2 = inlined_call_operand.vmem [shape: f32[64,64], index: 2, kind: input, shape index: {}]   ;;  %s3232_s3 = inlined_call_operand.vmem [shape: f32[64,32], index: 3, kind: input, shape index: {}]   ;;  %s3233_s4 = inlined_call_operand.hbm [shape: f32[16,32], index: 4, kind: output, shape index: {}]  }
   0x1   :  { %10 = vsyncpa [#allocation4], 0  ;;  %s15_s17 = sshll.u32 %s3229_s0, 4  ;;  %s2475_s18 = smov [#allocation2]   ;;  %s16_s17 = int_to_ptr.hbm [resolvable:$true] %s15_s17 }
   0x2   :  { %s17_s19 = sshll.u32 %s2475_s18, 4  ;;  %s2476_s20 = smov 128   ;;  %s18_s19 = int_to_ptr.vmem [resolvable:$true] %s17_s19 }
   0x3   :  { %s2477_s21 = smov 8  }
   0x4   :  { %23 = dma.hbm_to_vmem [thread:$0]  %s16_s17, 256, %s18_s19, [#allocation3], %s2476_s20, %s2476_s20, %s2477_s21  }
   0x5   :  { %2471 = dma.done.wait [#allocation3], 256  }
   0x6   :  { %2472 = vsyncadd [#allocation3], 4294967040  ;;  %vm53_vm0 = vcmask 261120   ;;  %v34_v0 = vld [vmem:[#allocation2] sm:$0xff]  ;;  %v35_v2 = vld [vmem:[#allocation2 + $0x8] sm:$0xff]  ;;  %v2478_v4 = vmov 32.0  }
   0x7   :  { %v54_v1 = vsel %vm53_vm0, %v34_v0, 0.0  ;;  %v57_v3 = vsel %vm53_vm0, %v35_v2, 0.0  ;;  %2378 = vrcp.f32 %v2478_v4  ;;  %v48_v21 = vld [vmem:[%s3230_s1 + $0x60] sm:$0xff]  ;;  %v47_v23 = vld [vmem:[%s3230_s1 + $0x58] sm:$0xff]  ;;  %v46_v26 = vld [vmem:[%s3230_s1 + $0x50] sm:$0xff]  ;;  %s2479_s7 = smov 32  }
   0x8   :  { %55 = vadd.xlane.f32.xlu0 %v54_v1  ;;  %v129_v22 = vand.u32 4294901760, %v48_v21  ;;  %v131_v25 = vand.u32 4294901760, %v47_v23  ;;  %v133_v29 = vand.u32 4294901760, %v46_v26  ;;  %v45_v30 = vld [vmem:[%s3230_s1 + $0x48] sm:$0xff]  ;;  %v40_v55 = vld [vmem:[%s3230_s1 + $0x20] sm:$0xff]  ;;  %s2481_s23 = smov 64  }
   0x9   :  { %v135_v34 = vand.u32 4294901760, %v45_v30  ;;  %v105_v60 = vperm.slane %v40_v55, 1  ;;  %vm921_vm8 = vcmask 523264   ;;  %s2357_s15 = sshll.u32 %s3233_s4, 4  ;;  %s2358_s15 = int_to_ptr.hbm [resolvable:$true] %s2357_s15 }
   0xa   :  { %v167_v24 = vsub.f32 %v48_v21, %v129_v22  ;;  %247 = vmatpush.msra.mxu3 %v129_v22  ;;  %130 = vmatpush.msra.mxu0 %v129_v22  ;;  %v173_v28 = vsub.f32 %v47_v23, %v131_v25  ;;  %v179_v33 = vsub.f32 %v46_v26, %v133_v29  ;;  %v2582_v23 = vld [vmem:[%s3232_s3 + $0x30] sm:$0xff] }
   0xb   :  { %v185_v38 = vsub.f32 %v45_v30, %v135_v34  ;;  %v334_v30 = vld [vmem:[%s3232_s3 + $0x8] sm:$0xff] }
   0xc   :  { %v168_v27 = vand.u32 4294901760, %v167_v24  ;;  %213 = vmatpush.msra.mxu2 %v167_v24  ;;  %249 = vmatpush.msra.mxu3 %v131_v25  ;;  %v174_v32 = vand.u32 4294901760, %v173_v28  ;;  %v180_v37 = vand.u32 4294901760, %v179_v33 }
   0xd   :  { %v2379_v5 = vpop.eup %2378  ;;  %132 = vmatpush.msra.mxu0 %v131_v25  ;;  %v186_v41 = vand.u32 4294901760, %v185_v38 }
   0xe   :  { %v61_v6 = vmul.f32 32.0, %v2379_v5  ;;  %vm65_vm1 = vweird.f32 %v2379_v5  ;;  %v169_v31 = vsub.f32 %v167_v24, %v168_v27  ;;  %216 = vmatpush.msra.mxu2 %v173_v28  ;;  %251 = vmatpush.msra.mxu3 %v133_v29  ;;  %v175_v36 = vsub.f32 %v173_v28, %v174_v32  ;;  %v336_v28 = vld [vmem:[%s3232_s3 + $0x18] sm:$0xff] }
   0xf   :  { %134 = vmatpush.msra.mxu0 %v133_v29  ;;  %v181_v40 = vsub.f32 %v179_v33, %v180_v37  ;;  %v187_v43 = vsub.f32 %v185_v38, %v186_v41 }
  0x10   :  { %58 = vadd.xlane.f32.xlu0 %v57_v3  ;;  %v62_v7 = vsub.f32 1.0, %v61_v6  ;;  %v170_v35 = vand.u32 4294901760, %v169_v31  ;;  %219 = vmatpush.msra.mxu2 %v179_v33  ;;  %v176_v39 = vand.u32 4294901760, %v175_v36 }
  0x11   :  { %253 = vmatpush.msra.mxu3 %v135_v34  ;;  %136 = vmatpush.msra.mxu0 %v135_v34  ;;  %v182_v42 = vand.u32 4294901760, %v181_v40  ;;  %v188_v44 = vand.u32 4294901760, %v187_v43 }
  0x12   :  { %v63_v8 = vmul.f32 %v2379_v5, %v62_v7  ;;  %171 = vmatpush.msra.mxu1 %v170_v35  ;;  %222 = vmatpush.msra.mxu2 %v185_v38 }
  0x13   :  { %282 = vmatpush.msrb.mxu0 %v168_v27 }
  0x14   :  { %v64_v9 = vadd.f32 %v2379_v5, %v63_v8  ;;  %177 = vmatpush.msra.mxu1 %v176_v39 }
  0x15   :  { %286 = vmatpush.msrb.mxu0 %v174_v32 }
  0x16   :  { %v2516_v10 = vsel %vm65_vm1, %v2379_v5, %v64_v9  ;;  %183 = vmatpush.msra.mxu1 %v182_v42 }
  0x17   :  { %290 = vmatpush.msrb.mxu0 %v180_v37 }
  0x18   :  { %189 = vmatpush.msra.mxu1 %v188_v44 }
  0x19   :  { %294 = vmatpush.msrb.mxu0 %v186_v41 }
  0x1a   :  { %317 = vmatpush.msrb.mxu1 %v129_v22 }
  0x1c   :  { %319 = vmatpush.msrb.mxu1 %v131_v25 }
  0x1e   :  { %321 = vmatpush.msrb.mxu1 %v133_v29  ;;  %v335_v29 = vld [vmem:[%s3232_s3 + $0x10] sm:$0xff] }
  0x20   :  { %323 = vmatpush.msrb.mxu1 %v135_v34 }
  0x7b   :  { %v56_v11 = vpop.xlane.xlu0 %55 }
  0x7c   :  { %v67_v12 = vmul.f32 %v2516_v10, %v56_v11 }
  0x7e   :  { %v2519_v13 = vsub.f32 %v34_v0, %v67_v12  ;;  %v108_v0 = vperm.slane %v40_v55, 2 }
  0x80   :  { %v71_v14 = vmul.f32 %v2519_v13, %v2519_v13 }
  0x82   :  { %v73_v15 = vsel %vm53_vm0, %v71_v14, 0.0  ;;  %v2565_v14 = vld [vmem:[%s3232_s3] sm:$0xff] }
  0x83   :  { %74 = vadd.xlane.f32.xlu1 %v73_v15  ;;  %v59_v16 = vpop.xlane.xlu0 %58  ;;  %v2570_v15 = vld [vmem:[%s3232_s3 + $0x20] sm:$0xff] }
  0x84   :  { %v68_v17 = vmul.f32 %v2516_v10, %v59_v16 }
  0x86   :  { %v2525_v18 = vsub.f32 %v35_v2, %v68_v17  ;;  %v2551_v2 = vld [vmem:[%s3232_s3 + $0x28] sm:$0xff] }
  0x87   :  { %359 = vrot.lane.b32.xlu0 %v2551_v2, %s2479_s7 }
  0x88   :  { %v72_v19 = vmul.f32 %v2525_v18, %v2525_v18 }
  0x8a   :  { %v76_v20 = vsel %vm53_vm0, %v72_v19, 0.0 }
  0x8b   :  { %77 = vadd.xlane.f32.xlu1 %v76_v20 }
  0x8f   :  { %349 = vrot.lane.b32.xlu0 %v2565_v14, %s2479_s7 }
  0xa4   :  { %357 = vrot.lane.b32.xlu1 %v2570_v15, %s2479_s7 }
  0xf6   :  { %v75_v45 = vpop.xlane.xlu1 %74 }
  0xf7   :  { %v79_v46 = vmul.f32 %v75_v45, %v2516_v10 }
  0xf9   :  { %v81_v47 = vadd.f32 1e-05, %v79_v46 }
  0xfb   :  { %2380 = vrsqrt.f32 %v81_v47  ;;  %vm89_vm3 = vweird.f32 %v81_v47 }
  0xfe   :  { %v78_v48 = vpop.xlane.xlu1 %77 }
  0xff   :  { %v80_v49 = vmul.f32 %v78_v48, %v2516_v10 }
 0x101   :  { %v2381_v50 = vpop.eup %2380  ;;  %v82_v51 = vadd.f32 1e-05, %v80_v49 }
 0x102   :  { %v84_v52 = vmul.f32 %v2381_v50, %v81_v47  ;;  %vm90_vm2 = vweird.f32 %v2381_v50 }
 0x103   :  { %2382 = vrsqrt.f32 %v82_v51  ;;  %vm91_vm4 = vmor %vm89_vm3, %vm90_vm2  ;;  %vm99_vm6 = vweird.f32 %v82_v51 }
 0x104   :  { %v85_v53 = vmul.f32 %v2381_v50, %v84_v52 }
 0x106   :  { %v86_v54 = vmul.f32 0.5, %v85_v53  ;;  %v360_v53 = vpop.permute.xlu0 %359 }
 0x108   :  { %v87_v56 = vsub.f32 1.5, %v86_v54 }
 0x109   :  { %v2383_v57 = vpop.eup %2382 }
 0x10a   :  { %v88_v58 = vmul.f32 %v2381_v50, %v87_v56  ;;  %v94_v59 = vmul.f32 %v2383_v57, %v82_v51  ;;  %vm100_vm5 = vweird.f32 %v2383_v57 }
 0x10b   :  { %vm101_vm7 = vmor %vm99_vm6, %vm100_vm5 }
 0x10c   :  { %v92_v61 = vsel %vm91_vm4, %v2381_v50, %v88_v58  ;;  %v95_v62 = vmul.f32 %v2383_v57, %v94_v59 }
 0x10d   :  { %v103_v63 = vmul.f32 %v92_v61, %v2519_v13  ;;  %v2560_v13 = vld [vmem:[%s3232_s3 + $0x38] sm:$0xff]  ;;  %s2480_s3 = smov 96  }
 0x10e   :  { %v96_v1 = vmul.f32 0.5, %v95_v62  ;;  %363 = vrot.lane.b32.xlu2 %v2560_v13, %s2479_s7 }
 0x10f   :  { %v106_v3 = vmul.f32 %v105_v60, %v103_v63  ;;  %v350_v63 = vpop.permute.xlu0 %349 }
 0x110   :  { %v97_v4 = vsub.f32 1.5, %v96_v1 }
 0x111   :  { %v109_v5 = vadd.f32 %v108_v0, %v106_v3 }
 0x112   :  { %v98_v6 = vmul.f32 %v2383_v57, %v97_v4 }
 0x113   :  { %v112_v7 = vsel %vm53_vm0, %v109_v5, 0 }
 0x114   :  { %v102_v8 = vsel %vm101_vm7, %v2383_v57, %v98_v6  ;;  %v137_v9 = vand.u32 4294901760, %v112_v7 }
 0x115   :  { %v104_v11 = vmul.f32 %v102_v8, %v2525_v18 }
 0x116   :  { %191 = vmatmul.f32.vlgmr.msra.gmra.mxu1 %v137_v9  ;;  %v138_v12 = vsub.f32 %v112_v7, %v137_v9  ;;  %361 = vrot.lane.b32.xlu2 %v2582_v23, %s2479_s7  ;;  %v358_v62 = vpop.permute.xlu1 %357 }
 0x117   :  { %v107_v16 = vmul.f32 %v105_v60, %v104_v11 }
 0x118   :  { %225 = vmatmul.f32.vlgmr.msra.gmra.mxu2 %v138_v12  ;;  %v139_v17 = vand.u32 4294901760, %v138_v12 }
 0x119   :  { %v110_v18 = vadd.f32 %v108_v0, %v107_v16 }
 0x11a   :  { %257 = vmatmul.f32.vlgmr.msra.gmra.mxu3 %v139_v17  ;;  %v140_v19 = vsub.f32 %v138_v12, %v139_v17 }
 0x11b   :  { %v115_v20 = vsel %vm53_vm0, %v110_v18, 0 }
 0x11c   :  { %v141_v21 = vand.u32 4294901760, %v140_v19  ;;  %v145_v22 = vand.u32 4294901760, %v115_v20 }
 0x11e   :  { %142 = vmatmul.f32.vlgmr.msra.gmra.mxu0 %v141_v21  ;;  %195 = vmatmul.f32.gmra.mxu1 %v145_v22  ;;  %v146_v24 = vsub.f32 %v115_v20, %v145_v22 }
 0x11f   :  { %355 = vrot.lane.b32.xlu2 %v336_v28, %s2479_s7 }
 0x120   :  { %230 = vmatmul.f32.gmra.mxu2 %v146_v24  ;;  %v147_v25 = vand.u32 4294901760, %v146_v24 }
 0x122   :  { %263 = vmatmul.f32.gmra.mxu3 %v147_v25  ;;  %v148_v26 = vsub.f32 %v146_v24, %v147_v25 }
 0x124   :  { %v149_v27 = vand.u32 4294901760, %v148_v26 }
 0x126   :  { %150 = vmatmul.f32.gmra.mxu0 %v149_v27  ;;  %325 = vmatmul.f32.vlgmr.msrb.gmra.mxu1 %v137_v9 }
 0x127   :  { %353 = vrot.lane.b32.xlu2 %v335_v29, %s2479_s7 }
 0x12e   :  { %296 = vmatmul.f32.vlgmr.msrb.gmra.mxu0 %v137_v9  ;;  %329 = vmatmul.f32.gmra.mxu1 %v145_v22 }
 0x12f   :  { %351 = vrot.lane.b32.xlu2 %v334_v30, %s2479_s7 }
 0x136   :  { %300 = vmatmul.f32.gmra.mxu0 %v145_v22 }
 0x168   :  { %v364_v33 = vpop.permute.xlu2 %363 }
 0x170   :  { %v362_v40 = vpop.permute.xlu2 %361 }
 0x179   :  { %v356_v51 = vpop.permute.xlu2 %355 }
 0x181   :  { %v354_v61 = vpop.permute.xlu2 %353 }
 0x189   :  { %v352_v4 = vpop.permute.xlu2 %351 }
 0x193   :  { %v192_v31 = vpop.f32.mrf.mxu1 }
 0x19b   :  { %v143_v32 = vpop.f32.mrf.mxu0  ;;  %v196_v34 = vpop.f32.mrf.mxu1 }
 0x19c   :  { %v193_v35 = vadd.f32 %v192_v31, %v143_v32  ;;  %v226_v36 = vpop.f32.mrf.mxu2 }
 0x19d   :  { %v258_v39 = vpop.f32.mrf.mxu3 }
 0x19e   :  { %v227_v38 = vadd.f32 %v226_v36, %v193_v35 }
 0x1a0   :  { %v259_v41 = vadd.f32 %v258_v39, %v227_v38 }
 0x1a3   :  { %v151_v37 = vpop.f32.mrf.mxu0  ;;  %v326_v43 = vpop.f32.mrf.mxu1 }
 0x1a4   :  { %v197_v42 = vadd.f32 %v196_v34, %v151_v37  ;;  %v231_v46 = vpop.f32.mrf.mxu2 }
 0x1a5   :  { %v264_v50 = vpop.f32.mrf.mxu3 }
 0x1a6   :  { %v232_v47 = vadd.f32 %v231_v46, %v197_v42 }
 0x1a8   :  { %v265_v52 = vadd.f32 %v264_v50, %v232_v47 }
 0x1ab   :  { %v297_v44 = vpop.f32.mrf.mxu0  ;;  %v330_v56 = vpop.f32.mrf.mxu1 }
 0x1ac   :  { %v298_v45 = vadd.f32 %v297_v44, %v259_v41 }
 0x1ae   :  { %v2598_v48 = vadd.f32 %v326_v43, %v298_v45 }
 0x1b0   :  { %v379_v49 = vmul.f32 %v362_v40, %v2598_v48  ;;  %v377_v0 = vmul.f32 %v358_v62, %v2598_v48  ;;  %v373_v1 = vmul.f32 %v350_v63, %v2598_v48  ;;  %v375_v3 = vmul.f32 %v354_v61, %v2598_v48 }
 0x1b1   :  { %v446_v37 = vsel %vm53_vm0, %v2598_v48, 0 }
 0x1b2   :  { %441 = vrot.lane.b32.xlu1 %v379_v49, %s2480_s3  ;;  %v2686_v44 = vand.u32 4294901760, %v446_v37 }
 0x1b3   :  { %v301_v54 = vpop.f32.mrf.mxu0 }
 0x1b4   :  { %v302_v55 = vadd.f32 %v301_v54, %v265_v52 }
 0x1b6   :  { %v2601_v57 = vadd.f32 %v330_v56, %v302_v55 }
 0x1b8   :  { %v380_v58 = vmul.f32 %v364_v33, %v2601_v57  ;;  %v376_v59 = vmul.f32 %v356_v51, %v2601_v57  ;;  %v378_v60 = vmul.f32 %v360_v53, %v2601_v57  ;;  %v374_v5 = vmul.f32 %v352_v4, %v2601_v57 }
 0x1b9   :  { %v2701_v53 = vsub.f32 %v446_v37, %v2686_v44  ;;  %v449_v54 = vsel %vm53_vm0, %v2601_v57, 0 }
 0x1ba   :  { %443 = vrot.lane.b32.xlu2 %v380_v58, %s2480_s3  ;;  %435 = vrot.lane.b32.xlu1 %v376_v59, %s2480_s3 }
 0x1bb   :  { %439 = vrot.lane.b32.xlu0 %v378_v60, %s2480_s3 }
 0x1c2   :  { %437 = vrot.lane.b32.xlu2 %v377_v0, %s2480_s3  ;;  %429 = vrot.lane.b32.xlu1 %v373_v1, %s2480_s3  ;;  %v2720_v0 = vand.u32 4294901760, %v2701_v53  ;;  %v2722_v1 = vand.u32 4294901760, %v449_v54 }
 0x1c3   :  { %433 = vrot.lane.b32.xlu0 %v375_v3, %s2480_s3 }
 0x1ca   :  { %431 = vrot.lane.b32.xlu2 %v374_v5, %s2480_s3  ;;  %391 = vrot.lane.b32.xlu1 %v2551_v2, %s2481_s23 }
 0x1cb   :  { %395 = vrot.lane.b32.xlu0 %v2560_v13, %s2481_s23 }
 0x1d2   :  { %393 = vrot.lane.b32.xlu2 %v2582_v23, %s2481_s23  ;;  %387 = vrot.lane.b32.xlu1 %v336_v28, %s2481_s23 }
 0x1da   :  { %389 = vrot.lane.b32.xlu2 %v2570_v15, %s2481_s23  ;;  %383 = vrot.lane.b32.xlu1 %v334_v30, %s2481_s23 }
 0x1e2   :  { %385 = vrot.lane.b32.xlu2 %v335_v29, %s2481_s23  ;;  %381 = vrot.lane.b32.xlu1 %v2565_v14, %s2481_s23 }
 0x214   :  { %v444_v6 = vpop.permute.xlu2 %443 }
 0x215   :  { %v465_v2 = vsel %vm53_vm0, %v444_v6, 0 }
 0x216   :  { %v2624_v7 = vand.u32 4294901760, %v465_v2 }
 0x218   :  { %v2627_v8 = vsub.f32 %v465_v2, %v2624_v7  ;;  %476 = vmatpush.xpose.msrb.mxu2 %v2624_v7  ;;  %727 = vmatpush.xpose.msra.mxu1 %v2624_v7  ;;  %v494_v2 = vsub.f32 %v2701_v53, %v2720_v0 }
 0x21a   :  { %655 = vmatpush.xpose.msra.mxu0 %v2627_v8  ;;  %v566_v9 = vand.u32 4294901760, %v2627_v8 }
 0x21c   :  { %v438_v11 = vpop.permute.xlu2 %437  ;;  %v567_v12 = vsub.f32 %v2627_v8, %v566_v9 }
 0x21d   :  { %v459_v18 = vsel %vm53_vm0, %v438_v11, 0  ;;  %v2735_v11 = vsub.f32 %v449_v54, %v2722_v1 }
 0x21e   :  { %v568_v13 = vand.u32 4294901760, %v567_v12  ;;  %v2645_v20 = vand.u32 4294901760, %v459_v18 }
 0x220   :  { %569 = vmatpush.xpose.msrb.mxu3 %v568_v13  ;;  %v2655_v28 = vsub.f32 %v459_v18, %v2645_v20 }
 0x222   :  { %v584_v34 = vand.u32 4294901760, %v2655_v28 }
 0x224   :  { %v432_v14 = vpop.permute.xlu2 %431  ;;  %v442_v15 = vpop.permute.xlu1 %441  ;;  %v585_v43 = vsub.f32 %v2655_v28, %v584_v34 }
 0x225   :  { %v463_v16 = vsel %vm53_vm0, %v442_v15, 0  ;;  %v453_v38 = vsel %vm53_vm0, %v432_v14, 0  ;;  %v495_v15 = vand.u32 4294901760, %v494_v2 }
 0x226   :  { %v2637_v17 = vand.u32 4294901760, %v463_v16  ;;  %v2688_v45 = vand.u32 4294901760, %v453_v38  ;;  %v586_v52 = vand.u32 4294901760, %v585_v43 }
 0x228   :  { %v2641_v19 = vsub.f32 %v463_v16, %v2637_v17  ;;  %478 = vmatpush.xpose.msrb.mxu2 %v2637_v17  ;;  %729 = vmatpush.xpose.msra.mxu1 %v2637_v17  ;;  %v2706_v55 = vsub.f32 %v453_v38, %v2688_v45  ;;  %v501_v16 = vand.u32 4294901760, %v2735_v11 }
 0x22a   :  { %658 = vmatpush.xpose.msra.mxu0 %v2641_v19  ;;  %v572_v21 = vand.u32 4294901760, %v2641_v19  ;;  %v602_v6 = vand.u32 4294901760, %v2706_v55 }
 0x22c   :  { %v394_v22 = vpop.permute.xlu2 %393  ;;  %v436_v23 = vpop.permute.xlu1 %435  ;;  %v573_v24 = vsub.f32 %v2641_v19, %v572_v21  ;;  %v603_v13 = vsub.f32 %v2706_v55, %v602_v6 }
 0x22d   :  { %v411_v25 = vmul.f32 %v394_v22, %v2598_v48  ;;  %v457_v26 = vsel %vm53_vm0, %v436_v23, 0  ;;  %v440_v27 = vpop.permute.xlu0 %439  ;;  %v502_v23 = vsub.f32 %v2735_v11, %v501_v16 }
 0x22e   :  { %v461_v29 = vsel %vm53_vm0, %v440_v27, 0  ;;  %v574_v30 = vand.u32 4294901760, %v573_v24  ;;  %v2658_v31 = vand.u32 4294901760, %v457_v26  ;;  %v604_v18 = vand.u32 4294901760, %v603_v13 }
 0x22f   :  { %v2660_v32 = vand.u32 4294901760, %v461_v29  ;;  %1134 = vrot.lane.b32.xlu2 %v411_v25, %s2481_s23  ;;  %v503_v8 = vand.u32 4294901760, %v502_v23 }
 0x230   :  { %575 = vmatpush.xpose.msrb.mxu3 %v574_v30  ;;  %v2670_v35 = vsub.f32 %v457_v26, %v2658_v31 }
 0x231   :  { %v2664_v33 = vsub.f32 %v461_v29, %v2660_v32  ;;  %480 = vmatpush.xpose.msrb.mxu2 %v2660_v32  ;;  %731 = vmatpush.xpose.msra.mxu1 %v2660_v32 }
 0x232   :  { %v590_v49 = vand.u32 4294901760, %v2670_v35 }
 0x233   :  { %661 = vmatpush.xpose.msra.mxu0 %v2664_v33  ;;  %v578_v36 = vand.u32 4294901760, %v2664_v33 }
 0x234   :  { %v430_v39 = vpop.permute.xlu1 %429  ;;  %v591_v58 = vsub.f32 %v2670_v35, %v590_v49 }
 0x235   :  { %482 = vmatpush.xpose.msrb.mxu2 %v2645_v20  ;;  %733 = vmatpush.xpose.msra.mxu1 %v2645_v20  ;;  %v434_v40 = vpop.permute.xlu0 %433  ;;  %v579_v41 = vsub.f32 %v2664_v33, %v578_v36  ;;  %v451_v50 = vsel %vm53_vm0, %v430_v39, 0 }
 0x236   :  { %v455_v42 = vsel %vm53_vm0, %v434_v40, 0  ;;  %v2708_v56 = vand.u32 4294901760, %v451_v50  ;;  %v592_v4 = vand.u32 4294901760, %v591_v58 }
 0x237   :  { %v2690_v46 = vand.u32 4294901760, %v455_v42  ;;  %664 = vmatpush.xpose.msra.mxu0 %v2655_v28  ;;  %v580_v47 = vand.u32 4294901760, %v579_v41 }
 0x238   :  { %v607_v3 = vsub.f32 %v451_v50, %v2708_v56 }
 0x239   :  { %v2696_v51 = vsub.f32 %v455_v42, %v2690_v46  ;;  %484 = vmatpush.xpose.msrb.mxu2 %v2658_v31  ;;  %581 = vmatpush.xpose.msrb.mxu3 %v580_v47 }
 0x23a   :  { %735 = vmatpush.xpose.msra.mxu1 %v2658_v31  ;;  %v608_v14 = vand.u32 4294901760, %v607_v3 }
 0x23b   :  { %667 = vmatpush.xpose.msra.mxu0 %v2670_v35  ;;  %v596_v59 = vand.u32 4294901760, %v2696_v51 }
 0x23c   :  { %v392_v60 = vpop.permute.xlu1 %391  ;;  %v609_v22 = vsub.f32 %v607_v3, %v608_v14 }
 0x23d   :  { %v410_v61 = vmul.f32 %v392_v60, %v2601_v57  ;;  %486 = vmatpush.xpose.msrb.mxu2 %v2690_v46  ;;  %587 = vmatpush.xpose.msrb.mxu3 %v586_v52  ;;  %v396_v62 = vpop.permute.xlu0 %395  ;;  %v597_v5 = vsub.f32 %v2696_v51, %v596_v59 }
 0x23e   :  { %737 = vmatpush.xpose.msra.mxu1 %v2690_v46  ;;  %v412_v63 = vmul.f32 %v396_v62, %v2601_v57  ;;  %v610_v24 = vand.u32 4294901760, %v609_v22 }
 0x23f   :  { %670 = vmatpush.xpose.msra.mxu0 %v2696_v51  ;;  %1132 = vrot.lane.b32.xlu1 %v410_v61, %s2481_s23  ;;  %v598_v12 = vand.u32 4294901760, %v597_v5 }
 0x240   :  { %1136 = vrot.lane.b32.xlu0 %v412_v63, %s2481_s23 }
 0x241   :  { %488 = vmatpush.xpose.msrb.mxu2 %v2688_v45  ;;  %593 = vmatpush.xpose.msrb.mxu3 %v592_v4 }
 0x242   :  { %739 = vmatpush.xpose.msra.mxu1 %v2688_v45 }
 0x243   :  { %673 = vmatpush.xpose.msra.mxu0 %v2706_v55 }
 0x245   :  { %490 = vmatpush.xpose.msrb.mxu2 %v2708_v56  ;;  %599 = vmatpush.xpose.msrb.mxu3 %v598_v12 }
 0x246   :  { %741 = vmatpush.xpose.msra.mxu1 %v2708_v56 }
 0x247   :  { %676 = vmatpush.xpose.msra.mxu0 %v607_v3 }
 0x248   :  { %496 = vmatmul.f32.vlgmr.msrb.gmra.mxu2 %v495_v15 }
 0x249   :  { %802 = vmatpush.xpose.msra.mxu2 %v566_v9  ;;  %745 = vmatmul.f32.vlgmr.msra.gmra.mxu1 %v2720_v0  ;;  %v2786_v9 = vpop.permute.xlu2 %389 }
 0x24a   :  { %605 = vmatpush.xpose.msrb.mxu3 %v604_v18  ;;  %679 = vmatmul.f32.vlgmr.msra.gmra.mxu0 %v2701_v53 }
 0x24d   :  { %806 = vmatpush.xpose.msra.mxu2 %v572_v21 }
 0x24e   :  { %611 = vmatpush.xpose.msrb.mxu3 %v610_v24 }
 0x250   :  { %504 = vmatmul.f32.gmra.mxu2 %v503_v8 }
 0x251   :  { %810 = vmatpush.xpose.msra.mxu2 %v578_v36  ;;  %613 = vmatmul.f32.vlgmr.msrb.gmra.mxu3 %v2686_v44  ;;  %v2794_v19 = vpop.permute.xlu2 %385 }
 0x252   :  { %873 = vmatpush.xpose.msra.mxu3 %v2624_v7  ;;  %751 = vmatmul.f32.gmra.mxu1 %v501_v16  ;;  %v2784_v7 = vpop.permute.xlu1 %387 }
 0x253   :  { %684 = vmatmul.f32.gmra.mxu0 %v2735_v11 }
 0x255   :  { %814 = vmatpush.xpose.msra.mxu2 %v584_v34 }
 0x256   :  { %875 = vmatpush.xpose.msra.mxu3 %v2637_v17 }
 0x258   :  { %512 = vmatmul.f32.gmra.mxu2 %v495_v15 }
 0x259   :  { %818 = vmatpush.xpose.msra.mxu2 %v590_v49  ;;  %617 = vmatmul.f32.gmra.mxu3 %v2722_v1 }
 0x25a   :  { %877 = vmatpush.xpose.msra.mxu3 %v2660_v32  ;;  %757 = vmatmul.f32.gmra.mxu1 %v2720_v0  ;;  %v2790_v17 = vpop.permute.xlu1 %383 }
 0x25b   :  { %689 = vmatmul.f32.gmra.mxu0 %v2701_v53 }
 0x25d   :  { %822 = vmatpush.xpose.msra.mxu2 %v596_v59  ;;  %v413_v59 = vld [vmem:[%s3231_s2] sm:$0xff] }
 0x25e   :  { %879 = vmatpush.xpose.msra.mxu3 %v2645_v20 }
 0x260   :  { %520 = vmatmul.f32.gmra.mxu2 %v503_v8 }
 0x261   :  { %826 = vmatpush.xpose.msra.mxu2 %v602_v6  ;;  %621 = vmatmul.f32.gmra.mxu3 %v2686_v44 }
 0x262   :  { %881 = vmatpush.xpose.msra.mxu3 %v2658_v31  ;;  %763 = vmatmul.f32.gmra.mxu1 %v501_v16  ;;  %v2798_v20 = vpop.permute.xlu1 %381 }
 0x263   :  { %694 = vmatmul.f32.gmra.mxu0 %v2735_v11 }
 0x265   :  { %830 = vmatpush.xpose.msra.mxu2 %v608_v14 }
 0x266   :  { %883 = vmatpush.xpose.msra.mxu3 %v2690_v46 }
 0x268   :  { %528 = vmatmul.f32.gmra.mxu2 %v495_v15 }
 0x269   :  { %625 = vmatmul.f32.gmra.mxu3 %v2722_v1 }
 0x26a   :  { %885 = vmatpush.xpose.msra.mxu3 %v2688_v45  ;;  %769 = vmatmul.f32.gmra.mxu1 %v2720_v0 }
 0x26b   :  { %699 = vmatmul.f32.gmra.mxu0 %v2701_v53 }
 0x26e   :  { %887 = vmatpush.xpose.msra.mxu3 %v2708_v56 }
 0x270   :  { %536 = vmatmul.f32.gmra.mxu2 %v503_v8 }
 0x271   :  { %629 = vmatmul.f32.gmra.mxu3 %v2686_v44 }
 0x272   :  { %775 = vmatmul.f32.gmra.mxu1 %v501_v16 }
 0x273   :  { %704 = vmatmul.f32.gmra.mxu0 %v2735_v11 }
 0x278   :  { %544 = vmatmul.f32.gmra.mxu2 %v495_v15  ;;  %v415_v15 = vld [vmem:[%s3231_s2 + $0x10] sm:$0xff] }
 0x279   :  { %633 = vmatmul.f32.gmra.mxu3 %v2722_v1 }
 0x27a   :  { %781 = vmatmul.f32.gmra.mxu1 %v2720_v0 }
 0x27b   :  { %709 = vmatmul.f32.gmra.mxu0 %v2701_v53 }
 0x280   :  { %552 = vmatmul.f32.gmra.mxu2 %v503_v8 }
 0x281   :  { %637 = vmatmul.f32.gmra.mxu3 %v2686_v44 }
 0x282   :  { %787 = vmatmul.f32.gmra.mxu1 %v501_v16 }
 0x283   :  { %714 = vmatmul.f32.gmra.mxu0 %v2735_v11 }
 0x288   :  { %832 = vmatmul.f32.vlgmr.msra.gmra.mxu2 %v2686_v44 }
 0x289   :  { %641 = vmatmul.f32.gmra.mxu3 %v2722_v1  ;;  %v1135_v21 = vpop.permute.xlu2 %1134 }
 0x28a   :  { %v2800_v25 = vand.u32 4294901760, %v1135_v21 }
 0x28c   :  { %v2805_v26 = vsub.f32 %v1135_v21, %v2800_v25 }
 0x28e   :  { %v1275_v32 = vand.u32 4294901760, %v2805_v26 }
 0x290   :  { %836 = vmatmul.f32.gmra.mxu2 %v2722_v1  ;;  %v1276_v37 = vsub.f32 %v2805_v26, %v1275_v32 }
 0x291   :  { %889 = vmatmul.f32.vlgmr.msra.gmra.mxu3 %v2686_v44 }
 0x292   :  { %v1277_v40 = vand.u32 4294901760, %v1276_v37  ;;  %v416_v37 = vld [vmem:[%s3231_s2 + $0x18] sm:$0xff] }
 0x298   :  { %840 = vmatmul.f32.gmra.mxu2 %v2686_v44 }
 0x299   :  { %893 = vmatmul.f32.gmra.mxu3 %v2722_v1 }
 0x2a0   :  { %844 = vmatmul.f32.gmra.mxu2 %v2722_v1 }
 0x2a1   :  { %897 = vmatmul.f32.gmra.mxu3 %v2686_v44 }
 0x2a8   :  { %848 = vmatmul.f32.gmra.mxu2 %v2686_v44 }
 0x2a9   :  { %901 = vmatmul.f32.gmra.mxu3 %v2722_v1 }
 0x2b0   :  { %852 = vmatmul.f32.gmra.mxu2 %v2722_v1 }
 0x2b1   :  { %905 = vmatmul.f32.gmra.mxu3 %v2686_v44  ;;  %v1133_v27 = vpop.permute.xlu1 %1132 }
 0x2b2   :  { %v2807_v28 = vand.u32 4294901760, %v1133_v27  ;;  %v1137_v29 = vpop.permute.xlu0 %1136 }
 0x2b3   :  { %v2809_v30 = vand.u32 4294901760, %v1137_v29 }
 0x2b4   :  { %v2812_v31 = vsub.f32 %v1133_v27, %v2807_v28 }
 0x2b5   :  { %v2816_v33 = vsub.f32 %v1137_v29, %v2809_v30  ;;  %1179 = vmatpush.msrb.mxu0 %v2809_v30  ;;  %1430 = vmatpush.msrb.mxu3 %v2809_v30 }
 0x2b6   :  { %v1281_v34 = vand.u32 4294901760, %v2812_v31 }
 0x2b7   :  { %v1269_v35 = vand.u32 4294901760, %v2816_v33  ;;  %1181 = vmatpush.msrb.mxu0 %v2800_v25  ;;  %1358 = vmatpush.msrb.mxu2 %v2816_v33 }
 0x2b8   :  { %1432 = vmatpush.msrb.mxu3 %v2800_v25  ;;  %856 = vmatmul.f32.gmra.mxu2 %v2686_v44  ;;  %v1282_v39 = vsub.f32 %v2812_v31, %v1281_v34 }
 0x2b9   :  { %v1270_v36 = vsub.f32 %v2816_v33, %v1269_v35  ;;  %909 = vmatmul.f32.gmra.mxu3 %v2722_v1  ;;  %1183 = vmatpush.msrb.mxu0 %v2807_v28 }
 0x2ba   :  { %1361 = vmatpush.msrb.mxu2 %v2805_v26  ;;  %1434 = vmatpush.msrb.mxu3 %v2807_v28  ;;  %v1283_v41 = vand.u32 4294901760, %v1282_v39 }
 0x2bb   :  { %v1271_v38 = vand.u32 4294901760, %v1270_v36 }
 0x2bc   :  { %1364 = vmatpush.msrb.mxu2 %v2812_v31 }
 0x2bd   :  { %1272 = vmatpush.msrb.mxu1 %v1271_v38 }
 0x2bf   :  { %1278 = vmatpush.msrb.mxu1 %v1277_v40 }
 0x2c0   :  { %860 = vmatmul.f32.gmra.mxu2 %v2722_v1 }
 0x2c1   :  { %913 = vmatmul.f32.gmra.mxu3 %v2686_v44  ;;  %1284 = vmatpush.msrb.mxu1 %v1283_v41 }
 0x2c6   :  { %v746_v58 = vpop.f32.mrf.mxu1 }
 0x2c7   :  { %v680_v44 = vpop.f32.mrf.mxu0 }
 0x2c9   :  { %917 = vmatmul.f32.gmra.mxu3 %v2722_v1  ;;  %v414_v1 = vld [vmem:[%s3231_s2 + $0x8] sm:$0xff] }
 0x2cb   :  { %v497_v42 = vpop.f32.mrf.mxu2 }
 0x2cc   :  { %v498_v62 = vadd.f32 %v497_v42, %v413_v59 }
 0x2cf   :  { %v752_v5 = vpop.f32.mrf.mxu1 }
 0x2d0   :  { %v685_v63 = vpop.f32.mrf.mxu0 }
 0x2d3   :  { %v505_v43 = vpop.f32.mrf.mxu2 }
 0x2d4   :  { %v614_v45 = vpop.f32.mrf.mxu3  ;;  %v506_v2 = vadd.f32 %v505_v43, %v414_v1 }
 0x2d5   :  { %v615_v0 = vadd.f32 %v614_v45, %v498_v62 }
 0x2d7   :  { %v681_v6 = vadd.f32 %v680_v44, %v615_v0  ;;  %v758_v24 = vpop.f32.mrf.mxu1 }
 0x2d8   :  { %v690_v13 = vpop.f32.mrf.mxu0 }
 0x2d9   :  { %v747_v12 = vadd.f32 %v746_v58, %v681_v6  ;;  %v417_v58 = vld [vmem:[%s3231_s2 + $0x20] sm:$0xff] }
 0x2db   :  { %v513_v46 = vpop.f32.mrf.mxu2 }
 0x2dc   :  { %v618_v47 = vpop.f32.mrf.mxu3  ;;  %v514_v8 = vadd.f32 %v513_v46, %v415_v15 }
 0x2dd   :  { %v619_v11 = vadd.f32 %v618_v47, %v506_v2 }
 0x2df   :  { %v686_v22 = vadd.f32 %v685_v63, %v619_v11  ;;  %v764_v46 = vpop.f32.mrf.mxu1 }
 0x2e0   :  { %v695_v40 = vpop.f32.mrf.mxu0 }
 0x2e1   :  { %v753_v29 = vadd.f32 %v752_v5, %v686_v22 }
 0x2e3   :  { %v521_v49 = vpop.f32.mrf.mxu2 }
 0x2e4   :  { %v622_v50 = vpop.f32.mrf.mxu3  ;;  %v522_v43 = vadd.f32 %v521_v49, %v416_v37 }
 0x2e5   :  { %v623_v27 = vadd.f32 %v622_v50, %v514_v8 }
 0x2e7   :  { %v691_v41 = vadd.f32 %v690_v13, %v623_v27  ;;  %v418_v13 = vld [vmem:[%s3231_s2 + $0x28] sm:$0xff]  ;;  %v419_v27 = vld [vmem:[%s3231_s2 + $0x30] sm:$0xff] }
 0x2e8   :  { %v700_v1 = vpop.f32.mrf.mxu0 }
 0x2e9   :  { %v759_v50 = vadd.f32 %v758_v24, %v691_v41 }
 0x2eb   :  { %v529_v51 = vpop.f32.mrf.mxu2 }
 0x2ec   :  { %v626_v52 = vpop.f32.mrf.mxu3 }
 0x2ed   :  { %v627_v47 = vadd.f32 %v626_v52, %v522_v43  ;;  %v770_v52 = vpop.f32.mrf.mxu1  ;;  %v420_v43 = vld [vmem:[%s3231_s2 + $0x38] sm:$0xff] }
 0x2ef   :  { %v696_v63 = vadd.f32 %v695_v40, %v627_v47 }
 0x2f1   :  { %v765_v6 = vadd.f32 %v764_v46, %v696_v63 }
 0x2f3   :  { %v2843_v53 = vpop.f32.mrf.mxu2 }
 0x2f4   :  { %v630_v54 = vpop.f32.mrf.mxu3 }
 0x2fb   :  { %v2845_v55 = vpop.f32.mrf.mxu2 }
 0x2fc   :  { %v2847_v56 = vpop.f32.mrf.mxu3 }
 0x303   :  { %v2852_v60 = vpop.f32.mrf.mxu2 }
 0x304   :  { %v2854_v61 = vpop.f32.mrf.mxu3 }
 0x30b   :  { %v833_v4 = vpop.f32.mrf.mxu2 }
 0x30c   :  { %v2859_v3 = vpop.f32.mrf.mxu3  ;;  %v834_v14 = vadd.f32 %v833_v4, %v747_v12  ;;  %v530_v4 = vadd.f32 %v529_v51, %v417_v58  ;;  %v554_v58 = vadd.f32 %v2852_v60, %v420_v43 }
 0x30e   :  { %v631_v5 = vadd.f32 %v630_v54, %v530_v4 }
 0x313   :  { %v837_v16 = vpop.f32.mrf.mxu2 }
 0x314   :  { %v890_v18 = vpop.f32.mrf.mxu3  ;;  %v838_v36 = vadd.f32 %v837_v16, %v753_v29  ;;  %v538_v16 = vadd.f32 %v2843_v53, %v418_v13 }
 0x315   :  { %v2864_v23 = vadd.f32 %v890_v18, %v834_v14  ;;  %v701_v14 = vadd.f32 %v700_v1, %v631_v5  ;;  %v705_v18 = vpop.f32.mrf.mxu0 }
 0x316   :  { %v635_v22 = vadd.f32 %v2847_v56, %v538_v16 }
 0x317   :  { %v922_v21 = vsel %vm921_vm8, %v2864_v23, -inf  ;;  %v771_v54 = vadd.f32 %v770_v52, %v701_v14  ;;  %v405_v14 = vmul.f32 %v2798_v20, %v2598_v48 }
 0x318   :  { %923 = vmax.xlane.f32.xlu0 %v922_v21  ;;  %v776_v21 = vpop.f32.mrf.mxu1  ;;  %v706_v37 = vadd.f32 %v705_v18, %v635_v22 }
 0x31a   :  { %v777_v40 = vadd.f32 %v776_v21, %v706_v37 }
 0x31b   :  { %v841_v38 = vpop.f32.mrf.mxu2 }
 0x31c   :  { %v894_v39 = vpop.f32.mrf.mxu3  ;;  %v842_v44 = vadd.f32 %v841_v38, %v759_v50 }
 0x31d   :  { %v2871_v42 = vadd.f32 %v894_v39, %v838_v36  ;;  %v546_v39 = vadd.f32 %v2845_v55, %v419_v27  ;;  %v710_v41 = vpop.f32.mrf.mxu0  ;;  %v643_v55 = vadd.f32 %v2859_v3, %v554_v58  ;;  %v407_v3 = vmul.f32 %v2794_v19, %v2598_v48 }
 0x31f   :  { %v925_v45 = vsel %vm921_vm8, %v2871_v42, -inf  ;;  %v639_v53 = vadd.f32 %v2854_v61, %v546_v39 }
 0x320   :  { %926 = vmax.xlane.f32.xlu2 %v925_v45  ;;  %v782_v50 = vpop.f32.mrf.mxu1 }
 0x321   :  { %v711_v46 = vadd.f32 %v710_v41, %v639_v53 }
 0x323   :  { %v845_v59 = vpop.f32.mrf.mxu2  ;;  %v783_v61 = vadd.f32 %v782_v50, %v711_v46 }
 0x324   :  { %v898_v62 = vpop.f32.mrf.mxu3  ;;  %v846_v2 = vadd.f32 %v845_v59, %v765_v6 }
 0x325   :  { %v2878_v0 = vadd.f32 %v898_v62, %v842_v44  ;;  %v715_v63 = vpop.f32.mrf.mxu0 }
 0x326   :  { %v716_v4 = vadd.f32 %v715_v63, %v643_v55 }
 0x327   :  { %v928_v49 = vsel %vm921_vm8, %v2878_v0, -inf }
 0x328   :  { %929 = vmax.xlane.f32.xlu1 %v928_v49  ;;  %v788_v6 = vpop.f32.mrf.mxu1 }
 0x32b   :  { %v849_v11 = vpop.f32.mrf.mxu2 }
 0x32c   :  { %v902_v12 = vpop.f32.mrf.mxu3  ;;  %v850_v24 = vadd.f32 %v849_v11, %v771_v54 }
 0x32d   :  { %v2885_v15 = vadd.f32 %v902_v12, %v846_v2  ;;  %v789_v2 = vadd.f32 %v788_v6, %v716_v4 }
 0x32f   :  { %v931_v51 = vsel %vm921_vm8, %v2885_v15, -inf }
 0x330   :  { %932 = vmax.xlane.f32.xlu0 %v931_v51 }
 0x333   :  { %v853_v29 = vpop.f32.mrf.mxu2 }
 0x334   :  { %v906_v8 = vpop.f32.mrf.mxu3  ;;  %v854_v56 = vadd.f32 %v853_v29, %v777_v40 }
 0x335   :  { %v907_v36 = vadd.f32 %v906_v8, %v850_v24 }
 0x337   :  { %v934_v38 = vsel %vm921_vm8, %v907_v36, -inf }
 0x338   :  { %935 = vmax.xlane.f32.xlu2 %v934_v38  ;;  %v408_v38 = vmul.f32 %v2784_v7, %v2601_v57 }
 0x33b   :  { %v857_v44 = vpop.f32.mrf.mxu2 }
 0x33c   :  { %v910_v45 = vpop.f32.mrf.mxu3  ;;  %v858_v62 = vadd.f32 %v857_v44, %v783_v61 }
 0x33d   :  { %v911_v47 = vadd.f32 %v910_v45, %v854_v56 }
 0x33f   :  { %v937_v59 = vsel %vm921_vm8, %v911_v47, -inf }
 0x340   :  { %938 = vmax.xlane.f32.xlu1 %v937_v59 }
 0x343   :  { %v861_v52 = vpop.f32.mrf.mxu2 }
 0x344   :  { %v914_v1 = vpop.f32.mrf.mxu3  ;;  %v862_v11 = vadd.f32 %v861_v52, %v789_v2 }
 0x345   :  { %v915_v49 = vadd.f32 %v914_v1, %v858_v62 }
 0x347   :  { %v940_v5 = vsel %vm921_vm8, %v915_v49, -inf }
 0x348   :  { %941 = vmax.xlane.f32.xlu0 %v940_v5 }
 0x34c   :  { %v918_v12 = vpop.f32.mrf.mxu3 }
 0x34d   :  { %v919_v60 = vadd.f32 %v918_v12, %v862_v11 }
 0x34f   :  { %v943_v13 = vsel %vm921_vm8, %v919_v60, -inf }
 0x350   :  { %944 = vmax.xlane.f32.xlu0 %v943_v13 }
 0x359   :  { %1126 = vrot.lane.b32.xlu1 %v407_v3, %s2481_s23 }
 0x361   :  { %1122 = vrot.lane.b32.xlu1 %v405_v14, %s2481_s23 }
 0x38b   :  { %v924_v51 = vpop.xlane.xlu0 %923 }
 0x38c   :  { %v946_v16 = vsub.f32 %v2864_v23, %v924_v51  ;;  %v409_v23 = vmul.f32 %v2786_v9, %v2598_v48  ;;  %v406_v48 = vmul.f32 %v2790_v17, %v2601_v57 }
 0x38e   :  { %v954_v18 = vmul.f32 1.442695, %v946_v16 }
 0x390   :  { %2384 = vpow2.f32 %v954_v18 }
 0x393   :  { %v927_v54 = vpop.xlane.xlu2 %926 }
 0x394   :  { %v947_v22 = vsub.f32 %v2871_v42, %v927_v54 }
 0x396   :  { %v2913_v24 = vpop.eup %2384  ;;  %v956_v8 = vmul.f32 1.442695, %v947_v22 }
 0x397   :  { %v970_v19 = vsel %vm921_vm8, %v2913_v24, 0.0 }
 0x398   :  { %2386 = vpow2.f32 %v956_v8  ;;  %971 = vadd.xlane.f32.xlu0 %v970_v19 }
 0x39b   :  { %v930_v9 = vpop.xlane.xlu1 %929 }
 0x39e   :  { %v2917_v21 = vpop.eup %2386 }
 0x39f   :  { %v973_v20 = vsel %vm921_vm8, %v2917_v21, 0.0 }
 0x3a0   :  { %974 = vadd.xlane.f32.xlu2 %v973_v20 }
 0x3a3   :  { %v933_v53 = vpop.xlane.xlu0 %932 }
 0x3a4   :  { %v949_v57 = vsub.f32 %v2885_v15, %v933_v53 }
 0x3a6   :  { %v960_v58 = vmul.f32 1.442695, %v949_v57 }
 0x3ab   :  { %v936_v27 = vpop.xlane.xlu2 %935 }
 0x3ac   :  { %v950_v29 = vsub.f32 %v907_v36, %v936_v27  ;;  %1130 = vrot.lane.b32.xlu0 %v409_v23, %s2481_s23  ;;  %v948_v36 = vsub.f32 %v2878_v0, %v930_v9 }
 0x3ae   :  { %v962_v42 = vmul.f32 1.442695, %v950_v29  ;;  %v958_v40 = vmul.f32 1.442695, %v948_v36 }
 0x3b0   :  { %2388 = vpow2.f32 %v962_v42 }
 0x3b1   :  { %2390 = vpow2.f32 %v958_v40 }
 0x3b3   :  { %v939_v41 = vpop.xlane.xlu1 %938 }
 0x3b4   :  { %v951_v56 = vsub.f32 %v911_v47, %v939_v41 }
 0x3b6   :  { %v2924_v37 = vpop.eup %2388  ;;  %v964_v43 = vmul.f32 1.442695, %v951_v56 }
 0x3b7   :  { %v982_v39 = vsel %vm921_vm8, %v2924_v37, 0.0  ;;  %v2935_v45 = vpop.eup %2390 }
 0x3b8   :  { %1128 = vrot.lane.b32.xlu2 %v408_v38, %s2481_s23  ;;  %983 = vadd.xlane.f32.xlu1 %v982_v39  ;;  %2392 = vpow2.f32 %v964_v43  ;;  %v976_v50 = vsel %vm921_vm8, %v2935_v45, 0.0 }
 0x3bb   :  { %v942_v7 = vpop.xlane.xlu0 %941 }
 0x3bc   :  { %v952_v46 = vsub.f32 %v915_v49, %v942_v7 }
 0x3be   :  { %v966_v17 = vmul.f32 1.442695, %v952_v46  ;;  %v2940_v0 = vpop.eup %2392 }
 0x3bf   :  { %v985_v47 = vsel %vm921_vm8, %v2940_v0, 0.0 }
 0x3c0   :  { %1124 = vrot.lane.b32.xlu2 %v406_v48, %s2481_s23  ;;  %2394 = vpow2.f32 %v966_v17 }
 0x3c1   :  { %2396 = vpow2.f32 %v960_v58 }
 0x3c3   :  { %v945_v44 = vpop.xlane.xlu0 %944 }
 0x3c4   :  { %v953_v59 = vsub.f32 %v919_v60, %v945_v44 }
 0x3c6   :  { %v968_v55 = vmul.f32 1.442695, %v953_v59  ;;  %v2944_v61 = vpop.eup %2394 }
 0x3c7   :  { %v2946_v62 = vpop.eup %2396  ;;  %v988_v15 = vsel %vm921_vm8, %v2944_v61, 0.0 }
 0x3c8   :  { %2398 = vpow2.f32 %v968_v55  ;;  %v979_v63 = vsel %vm921_vm8, %v2946_v62, 0.0 }
 0x3cb   :  { %v1127_v2 = vpop.permute.xlu1 %1126 }
 0x3cc   :  { %v2956_v22 = vand.u32 4294901760, %v1127_v2 }
 0x3ce   :  { %v2952_v1 = vpop.eup %2398  ;;  %v2968_v53 = vsub.f32 %v1127_v2, %v2956_v22 }
 0x3cf   :  { %v991_v4 = vsel %vm921_vm8, %v2952_v1, 0.0 }
 0x3d3   :  { %v1123_v27 = vpop.permute.xlu1 %1122 }
 0x3d6   :  { %977 = vadd.xlane.f32.xlu0 %v976_v50 }
 0x3de   :  { %986 = vadd.xlane.f32.xlu0 %v985_v47  ;;  %v1299_v47 = vand.u32 4294901760, %v2968_v53 }
 0x3e6   :  { %989 = vadd.xlane.f32.xlu0 %v988_v15 }
 0x3e9   :  { %980 = vadd.xlane.f32.xlu2 %v979_v63 }
 0x3ee   :  { %992 = vadd.xlane.f32.xlu0 %v991_v4 }
 0x40b   :  { %v972_v49 = vpop.xlane.xlu0 %971 }
 0x40c   :  { %2400 = vrcp.f32 %v972_v49  ;;  %v1005_v12 = vand.u32 2147483648, %v972_v49  ;;  %v1003_v13 = vand.u32 2147483647, %v972_v49  ;;  %vm999_vm10 = vweird.f32 %v972_v49 }
 0x40e   :  { %v1006_v51 = vor.u32 1.1754944e-38, %v1005_v12  ;;  %vm1004_vm12 = vcmp.eq.f32.partialorder %v1003_v13, 8.507059e+37 }
 0x412   :  { %v2401_v5 = vpop.eup %2400 }
 0x413   :  { %v995_v6 = vmul.f32 %v2401_v5, %v972_v49  ;;  %v975_v52 = vpop.xlane.xlu2 %974  ;;  %vm1000_vm9 = vweird.f32 %v2401_v5 }
 0x414   :  { %2402 = vrcp.f32 %v975_v52  ;;  %vm1001_vm11 = vmor %vm999_vm10, %vm1000_vm9  ;;  %v1018_v29 = vand.u32 2147483647, %v975_v52  ;;  %v1020_v42 = vand.u32 2147483648, %v975_v52  ;;  %vm1014_vm14 = vweird.f32 %v975_v52 }
 0x415   :  { %v996_v11 = vsub.f32 1.0, %v995_v6 }
 0x416   :  { %v1021_v7 = vor.u32 1.1754944e-38, %v1020_v42  ;;  %vm1019_vm1 = vcmp.eq.f32.partialorder %v1018_v29, 8.507059e+37 }
 0x417   :  { %v997_v60 = vmul.f32 %v2401_v5, %v996_v11 }
 0x419   :  { %v998_v3 = vadd.f32 %v2401_v5, %v997_v60  ;;  %v1300_v60 = vsub.f32 %v2968_v53, %v1299_v47 }
 0x41a   :  { %v2403_v14 = vpop.eup %2402 }
 0x41b   :  { %v1002_v16 = vsel %vm1001_vm11, %v2401_v5, %v998_v3  ;;  %v1010_v18 = vmul.f32 %v2403_v14, %v975_v52  ;;  %v1129_v54 = vpop.permute.xlu2 %1128  ;;  %vm1015_vm13 = vweird.f32 %v2403_v14 }
 0x41c   :  { %v1007_v8 = vsel %vm1004_vm12, %v1006_v51, %v1002_v16  ;;  %v2958_v19 = vand.u32 4294901760, %v1129_v54  ;;  %vm1016_vm15 = vmor %vm1014_vm14, %vm1015_vm13  ;;  %v1301_v51 = vand.u32 4294901760, %v1300_v60 }
 0x41d   :  { %v1008_v20 = vmul.f32 %v2913_v24, %v1007_v8  ;;  %v1011_v23 = vsub.f32 1.0, %v1010_v18  ;;  %v2972_v24 = vand.u32 4294901760, %v1123_v27 }
 0x41e   :  { %v2962_v38 = vsub.f32 %v1129_v54, %v2958_v19  ;;  %v1131_v39 = vpop.permute.xlu0 %1130 }
 0x41f   :  { %v1012_v48 = vmul.f32 %v2403_v14, %v1011_v23  ;;  %v2964_v9 = vand.u32 4294901760, %v1131_v39  ;;  %v1147_v36 = vsel %vm921_vm8, %v1008_v20, 0  ;;  %v1310_v55 = vsub.f32 %v1123_v27, %v2972_v24 }
 0x420   :  { %v2970_v40 = vand.u32 4294901760, %v1147_v36  ;;  %v1293_v43 = vand.u32 4294901760, %v2962_v38 }
 0x421   :  { %v1013_v41 = vadd.f32 %v2403_v14, %v1012_v48  ;;  %v1286_v56 = vsub.f32 %v1131_v39, %v2964_v9  ;;  %1185 = vmatpush.msrb.mxu0 %v2964_v9  ;;  %1436 = vmatpush.msrb.mxu3 %v2964_v9 }
 0x422   :  { %v1195_v46 = vsub.f32 %v1147_v36, %v2970_v40  ;;  %v1294_v5 = vsub.f32 %v2962_v38, %v1293_v43 }
 0x423   :  { %v1017_v50 = vsel %vm1016_vm15, %v2403_v14, %v1013_v41  ;;  %v1287_v57 = vand.u32 4294901760, %v1286_v56  ;;  %v1125_v17 = vpop.permute.xlu2 %1124  ;;  %1187 = vmatpush.msrb.mxu0 %v2958_v19  ;;  %1367 = vmatpush.msrb.mxu2 %v1286_v56 }
 0x424   :  { %v2980_v44 = vand.u32 4294901760, %v1125_v17  ;;  %1438 = vmatpush.msrb.mxu3 %v2958_v19  ;;  %v1196_v58 = vand.u32 4294901760, %v1195_v46  ;;  %v1022_v59 = vsel %vm1019_vm1, %v1021_v7, %v1017_v50  ;;  %v1295_v13 = vand.u32 4294901760, %v1294_v5 }
 0x425   :  { %1189 = vmatpush.msrb.mxu0 %v2956_v22  ;;  %1370 = vmatpush.msrb.mxu2 %v2962_v38  ;;  %v1288_v15 = vsub.f32 %v1286_v56, %v1287_v57  ;;  %v1023_v63 = vmul.f32 %v2917_v21, %v1022_v59  ;;  %v1311_v21 = vand.u32 4294901760, %v1310_v55 }
 0x426   :  { %v1304_v4 = vsub.f32 %v1125_v17, %v2980_v44  ;;  %1440 = vmatpush.msrb.mxu3 %v2956_v22  ;;  %v1197_v49 = vsub.f32 %v1195_v46, %v1196_v58 }
 0x427   :  { %1191 = vmatpush.msrb.mxu0 %v2980_v44  ;;  %1373 = vmatpush.msrb.mxu2 %v2968_v53  ;;  %v1289_v6 = vand.u32 4294901760, %v1288_v15  ;;  %v1150_v52 = vsel %vm921_vm8, %v1023_v63, 0  ;;  %v1312_v18 = vsub.f32 %v1310_v55, %v1311_v21 }
 0x428   :  { %v1305_v2 = vand.u32 4294901760, %v1304_v4  ;;  %1442 = vmatpush.msrb.mxu3 %v2980_v44  ;;  %v1198_v11 = vand.u32 4294901760, %v1197_v49  ;;  %v2995_v12 = vand.u32 4294901760, %v1150_v52 }
 0x429   :  { %1193 = vmatpush.msrb.mxu0 %v2972_v24  ;;  %1290 = vmatpush.msrb.mxu1 %v1289_v6  ;;  %v1313_v20 = vand.u32 4294901760, %v1312_v18 }
 0x42a   :  { %1376 = vmatpush.msrb.mxu2 %v1304_v4  ;;  %1444 = vmatpush.msrb.mxu3 %v2972_v24  ;;  %v1306_v3 = vsub.f32 %v1304_v4, %v1305_v2  ;;  %v1203_v14 = vsub.f32 %v1150_v52, %v2995_v12 }
 0x42b   :  { %1199 = vmatmul.f32.vlgmr.msrb.gmra.mxu0 %v1198_v11  ;;  %1448 = vmatmul.f32.vlgmr.msrb.gmra.mxu3 %v1196_v58  ;;  %v984_v26 = vpop.xlane.xlu1 %983 }
 0x42c   :  { %1505 = vmatpush.msra.mxu0 %v1269_v35  ;;  %1296 = vmatpush.msrb.mxu1 %v1295_v13  ;;  %v1307_v16 = vand.u32 4294901760, %v1306_v3  ;;  %v1204_v54 = vand.u32 4294901760, %v1203_v14  ;;  %2404 = vrcp.f32 %v984_v26  ;;  %vm1059_vm7 = vweird.f32 %v984_v26 }
 0x42d   :  { %1379 = vmatpush.msrb.mxu2 %v1310_v55  ;;  %v1063_v17 = vand.u32 2147483647, %v984_v26 }
 0x42e   :  { %1382 = vmatmul.f32.vlgmr.msrb.gmra.mxu2 %v1195_v46  ;;  %1509 = vmatpush.msra.mxu0 %v1275_v32  ;;  %v1205_v8 = vsub.f32 %v1203_v14, %v1204_v54  ;;  %v1065_v46 = vand.u32 2147483648, %v984_v26 }
 0x42f   :  { %1302 = vmatpush.msrb.mxu1 %v1301_v51  ;;  %vm1064_vm10 = vcmp.eq.f32.partialorder %v1063_v17, 8.507059e+37 }
 0x430   :  { %1513 = vmatpush.msra.mxu0 %v1281_v34  ;;  %v1206_v23 = vand.u32 4294901760, %v1205_v8  ;;  %v1066_v55 = vor.u32 1.1754944e-38, %v1065_v46 }
 0x431   :  { %1308 = vmatpush.msrb.mxu1 %v1307_v16 }
 0x432   :  { %1517 = vmatpush.msra.mxu0 %v1287_v57 }
 0x433   :  { %1314 = vmatpush.msrb.mxu1 %v1313_v20  ;;  %1207 = vmatmul.f32.gmra.mxu0 %v1206_v23 }
 0x434   :  { %1316 = vmatmul.f32.vlgmr.msrb.gmra.mxu1 %v2970_v40  ;;  %1454 = vmatmul.f32.gmra.mxu3 %v1204_v54 }
 0x435   :  { %1521 = vmatpush.msra.mxu0 %v1293_v43  ;;  %1576 = vmatpush.msra.mxu1 %v2809_v30 }
 0x436   :  { %1387 = vmatmul.f32.gmra.mxu2 %v1203_v14 }
 0x437   :  { %1525 = vmatpush.msra.mxu0 %v1299_v47  ;;  %1578 = vmatpush.msra.mxu1 %v2800_v25  ;;  %v2405_v25 = vpop.eup %2404 }
 0x438   :  { %v1055_v33 = vmul.f32 %v2405_v25, %v984_v26  ;;  %vm1060_vm6 = vweird.f32 %v2405_v25 }
 0x439   :  { %1529 = vmatpush.msra.mxu0 %v1305_v2  ;;  %1580 = vmatpush.msra.mxu1 %v2807_v28  ;;  %vm1061_vm9 = vmor %vm1059_vm7, %vm1060_vm6 }
 0x43a   :  { %v1056_v27 = vsub.f32 1.0, %v1055_v33 }
 0x43b   :  { %1533 = vmatpush.msra.mxu0 %v1311_v21  ;;  %1582 = vmatpush.msra.mxu1 %v2964_v9 }
 0x43c   :  { %1320 = vmatmul.f32.gmra.mxu1 %v2995_v12  ;;  %v1057_v36 = vmul.f32 %v2405_v25, %v1056_v27 }
 0x43d   :  { %1584 = vmatpush.msra.mxu1 %v2958_v19 }
 0x43e   :  { %v1058_v7 = vadd.f32 %v2405_v25, %v1057_v36 }
 0x43f   :  { %1586 = vmatpush.msra.mxu1 %v2956_v22 }
 0x440   :  { %v1062_v59 = vsel %vm1061_vm9, %v2405_v25, %v1058_v7 }
 0x441   :  { %1588 = vmatpush.msra.mxu1 %v2980_v44  ;;  %v1067_v5 = vsel %vm1064_vm10, %v1066_v55, %v1062_v59 }
 0x442   :  { %v1068_v54 = vmul.f32 %v2924_v37, %v1067_v5 }
 0x443   :  { %1590 = vmatpush.msra.mxu1 %v2972_v24 }
 0x444   :  { %v1159_v37 = vsel %vm921_vm8, %v1068_v54, 0 }
 0x445   :  { %v3067_v27 = vand.u32 4294901760, %v1159_v37 }
 0x449   :  { %v978_v30 = vpop.xlane.xlu0 %977 }
 0x44a   :  { %2406 = vrcp.f32 %v978_v30  ;;  %v1035_v35 = vand.u32 2147483648, %v978_v30  ;;  %v1033_v22 = vand.u32 2147483647, %v978_v30  ;;  %vm1029_vm3 = vweird.f32 %v978_v30 }
 0x44c   :  { %v1036_v42 = vor.u32 1.1754944e-38, %v1035_v35  ;;  %vm1034_vm5 = vcmp.eq.f32.partialorder %v1033_v22, 8.507059e+37 }
 0x450   :  { %v2407_v31 = vpop.eup %2406 }
 0x451   :  { %v1025_v28 = vmul.f32 %v2407_v31, %v978_v30  ;;  %v3017_v32 = vpop.xlane.xlu0 %986  ;;  %vm1030_vm2 = vweird.f32 %v2407_v31 }
 0x452   :  { %2408 = vrcp.f32 %v3017_v32  ;;  %vm1031_vm4 = vmor %vm1029_vm3, %vm1030_vm2  ;;  %vm1074_vm13 = vweird.f32 %v3017_v32  ;;  %v1080_v14 = vand.u32 2147483648, %v3017_v32  ;;  %v1078_v16 = vand.u32 2147483647, %v3017_v32 }
 0x453   :  { %v1026_v34 = vsub.f32 1.0, %v1025_v28 }
 0x454   :  { %v1081_v25 = vor.u32 1.1754944e-38, %v1080_v14  ;;  %vm1079_vm3 = vcmp.eq.f32.partialorder %v1078_v16, 8.507059e+37 }
 0x455   :  { %v1027_v19 = vmul.f32 %v2407_v31, %v1026_v34 }
 0x457   :  { %v1028_v29 = vadd.f32 %v2407_v31, %v1027_v19 }
 0x458   :  { %v3020_v38 = vpop.eup %2408 }
 0x459   :  { %v1032_v39 = vsel %vm1031_vm4, %v2407_v31, %v1028_v29  ;;  %v3022_v48 = vpop.xlane.xlu0 %989  ;;  %v1070_v24 = vmul.f32 %v3020_v38, %v3017_v32  ;;  %vm1075_vm11 = vweird.f32 %v3020_v38 }
 0x45a   :  { %v1037_v9 = vsel %vm1034_vm5, %v1036_v42, %v1032_v39  ;;  %2410 = vrcp.f32 %v3022_v48  ;;  %vm3047_vm14 = vmor %vm1074_vm13, %vm1075_vm11  ;;  %v1095_v19 = vand.u32 2147483648, %v3022_v48  ;;  %vm1089_vm5 = vweird.f32 %v3022_v48 }
 0x45b   :  { %v1038_v53 = vmul.f32 %v2935_v45, %v1037_v9  ;;  %v1071_v50 = vsub.f32 1.0, %v1070_v24 }
 0x45c   :  { %v981_v41 = vpop.xlane.xlu2 %980  ;;  %v1096_v9 = vor.u32 1.1754944e-38, %v1095_v19 }
 0x45d   :  { %2412 = vrcp.f32 %v981_v41  ;;  %v1153_v56 = vsel %vm921_vm8, %v1038_v53, 0  ;;  %v1072_v15 = vmul.f32 %v3020_v38, %v1071_v50  ;;  %v1048_v52 = vand.u32 2147483647, %v981_v41 }
 0x45e   :  { %v3029_v43 = vand.u32 4294901760, %v1153_v56  ;;  %v1050_v2 = vand.u32 2147483648, %v981_v41  ;;  %vm1044_vm15 = vweird.f32 %v981_v41  ;;  %v1227_v53 = vsub.f32 %v1159_v37, %v3067_v27 }
 0x45f   :  { %v1073_v21 = vadd.f32 %v3020_v38, %v1072_v15  ;;  %vm1049_vm2 = vcmp.eq.f32.partialorder %v1048_v52, 8.507059e+37 }
 0x460   :  { %v3031_v57 = vpop.eup %2410  ;;  %1324 = vmatmul.f32.gmra.mxu1 %v3029_v43  ;;  %v1211_v44 = vsub.f32 %v1153_v56, %v3029_v43  ;;  %v1051_v8 = vor.u32 1.1754944e-38, %v1050_v2  ;;  %v1228_v46 = vand.u32 4294901760, %v1227_v53 }
 0x461   :  { %v3034_v45 = vpop.xlane.xlu0 %992  ;;  %v1085_v63 = vmul.f32 %v3031_v57, %v3022_v48  ;;  %v1077_v20 = vsel %vm3047_vm14, %v3020_v38, %v1073_v21  ;;  %vm1090_vm4 = vweird.f32 %v3031_v57 }
 0x462   :  { %2414 = vrcp.f32 %v3034_v45  ;;  %1392 = vmatmul.f32.gmra.mxu2 %v1211_v44  ;;  %v1212_v47 = vand.u32 4294901760, %v1211_v44  ;;  %v1082_v32 = vsel %vm1079_vm3, %v1081_v25, %v1077_v20  ;;  %vm1091_vm6 = vmor %vm1089_vm5, %vm1090_vm4  ;;  %v1110_v56 = vand.u32 2147483648, %v3034_v45 }
 0x463   :  { %v2413_v58 = vpop.eup %2412  ;;  %v1086_v60 = vsub.f32 1.0, %v1085_v63  ;;  %v1083_v29 = vmul.f32 %v2940_v0, %v1082_v32  ;;  %vm1104_vm10 = vweird.f32 %v3034_v45  ;;  %v1229_v59 = vsub.f32 %v1227_v53, %v1228_v46  ;;  %v52_v32 = vld [vmem:[%s3230_s1 + $0x80] sm:$0xff] }
 0x464   :  { %v1040_v4 = vmul.f32 %v2413_v58, %v981_v41  ;;  %1460 = vmatmul.f32.gmra.mxu3 %v1212_v47  ;;  %v1213_v49 = vsub.f32 %v1211_v44, %v1212_v47  ;;  %vm1045_vm12 = vweird.f32 %v2413_v58 }
 0x465   :  { %vm1046_vm1 = vmor %vm1044_vm15, %vm1045_vm12  ;;  %v1087_v23 = vmul.f32 %v3031_v57, %v1086_v60  ;;  %v1162_v24 = vsel %vm921_vm8, %v1083_v29, 0  ;;  %v1230_v63 = vand.u32 4294901760, %v1229_v59 }
 0x466   :  { %v1041_v6 = vsub.f32 1.0, %v1040_v4  ;;  %v1214_v11 = vand.u32 4294901760, %v1213_v49  ;;  %v1234_v50 = vand.u32 4294901760, %v1162_v24 }
 0x467   :  { %v1088_v33 = vadd.f32 %v3031_v57, %v1087_v23 }
 0x468   :  { %v1042_v13 = vmul.f32 %v2413_v58, %v1041_v6  ;;  %v3043_v3 = vpop.eup %2414  ;;  %1215 = vmatmul.f32.gmra.mxu0 %v1214_v11  ;;  %v1235_v47 = vsub.f32 %v1162_v24, %v1234_v50 }
 0x469   :  { %v1100_v30 = vmul.f32 %v3043_v3, %v3034_v45  ;;  %v1092_v38 = vsel %vm1091_vm6, %v3031_v57, %v1088_v33  ;;  %vm1105_vm9 = vweird.f32 %v3043_v3  ;;  %v1108_v57 = vand.u32 2147483647, %v3034_v45 }
 0x46a   :  { %v1043_v18 = vadd.f32 %v2413_v58, %v1042_v13  ;;  %vm1106_vm11 = vmor %vm1104_vm10, %vm1105_vm9  ;;  %v1236_v4 = vand.u32 4294901760, %v1235_v47  ;;  %v3110_v33 = vand.u32 4294901760, %v52_v32 }
 0x46b   :  { %v1101_v34 = vsub.f32 1.0, %v1100_v30  ;;  %vm1109_vm12 = vcmp.eq.f32.partialorder %v1108_v57, 8.507059e+37 }
 0x46c   :  { %v1047_v26 = vsel %vm1046_vm1, %v2413_v58, %v1043_v18  ;;  %v1111_v58 = vor.u32 1.1754944e-38, %v1110_v56  ;;  %v1237_v49 = vsub.f32 %v1235_v47, %v1236_v4  ;;  %1650 = vmatpush.msra.mxu2 %v3110_v33  ;;  %1767 = vmatpush.msrb.mxu1 %v3110_v33 }
 0x46d   :  { %v1052_v31 = vsel %vm1049_vm2, %v1051_v8, %v1047_v26  ;;  %v1102_v39 = vmul.f32 %v3043_v3, %v1101_v34  ;;  %v3114_v34 = vsub.f32 %v52_v32, %v3110_v33 }
 0x46e   :  { %v1053_v28 = vmul.f32 %v2946_v62, %v1052_v31  ;;  %v1093_v62 = vand.u32 2147483647, %v3022_v48  ;;  %v1238_v52 = vand.u32 4294901760, %v1237_v49 }
 0x46f   :  { %v1103_v41 = vadd.f32 %v3043_v3, %v1102_v39  ;;  %1733 = vmatpush.msrb.mxu0 %v3114_v34 }
 0x470   :  { %v1156_v35 = vsel %vm921_vm8, %v1053_v28, 0  ;;  %vm1094_vm7 = vcmp.eq.f32.partialorder %v1093_v62, 8.507059e+37 }
 0x471   :  { %v3065_v22 = vand.u32 4294901760, %v1156_v35  ;;  %v1097_v48 = vsel %vm1094_vm7, %v1096_v9, %v1092_v38  ;;  %v1107_v44 = vsel %vm1106_vm11, %v3043_v3, %v1103_v41 }
 0x472   :  { %v1098_v17 = vmul.f32 %v2944_v61, %v1097_v48  ;;  %v1112_v15 = vsel %vm1109_vm12, %v1111_v58, %v1107_v44  ;;  %v50_v58 = vld [vmem:[%s3230_s1 + $0x70] sm:$0xff] }
 0x473   :  { %1328 = vmatmul.f32.gmra.mxu1 %v3065_v22  ;;  %v1219_v42 = vsub.f32 %v1156_v35, %v3065_v22  ;;  %v1113_v61 = vmul.f32 %v2952_v1, %v1112_v15 }
 0x474   :  { %v1165_v55 = vsel %vm921_vm8, %v1098_v17, 0 }
 0x475   :  { %1397 = vmatmul.f32.gmra.mxu2 %v1219_v42  ;;  %v1220_v36 = vand.u32 4294901760, %v1219_v42  ;;  %v1242_v45 = vand.u32 4294901760, %v1165_v55  ;;  %v1168_v6 = vsel %vm921_vm8, %v1113_v61, 0 }
 0x476   :  { %v1250_v11 = vand.u32 4294901760, %v1168_v6 }
 0x477   :  { %1466 = vmatmul.f32.gmra.mxu3 %v1220_v36  ;;  %v1221_v0 = vsub.f32 %v1219_v42, %v1220_v36  ;;  %v1243_v5 = vsub.f32 %v1165_v55, %v1242_v45  ;;  %v51_v36 = vld [vmem:[%s3230_s1 + $0x78] sm:$0xff] }
 0x478   :  { %v1251_v60 = vsub.f32 %v1168_v6, %v1250_v11 }
 0x479   :  { %v1222_v7 = vand.u32 4294901760, %v1221_v0  ;;  %v1244_v2 = vand.u32 4294901760, %v1243_v5 }
 0x47a   :  { %v1252_v3 = vand.u32 4294901760, %v1251_v60 }
 0x47b   :  { %1223 = vmatmul.f32.gmra.mxu0 %v1222_v7  ;;  %1332 = vmatmul.f32.gmra.mxu1 %v3067_v27  ;;  %v1245_v21 = vsub.f32 %v1243_v5, %v1244_v2 }
 0x47c   :  { %v1253_v1 = vsub.f32 %v1251_v60, %v1252_v3 }
 0x47d   :  { %1402 = vmatmul.f32.gmra.mxu2 %v1227_v53  ;;  %v1246_v13 = vand.u32 4294901760, %v1245_v21  ;;  %v3131_v53 = vand.u32 4294901760, %v51_v36 }
 0x47e   :  { %v1254_v14 = vand.u32 4294901760, %v1253_v1  ;;  %v49_v1 = vld [vmem:[%s3230_s1 + $0x68] sm:$0xff] }
 0x47f   :  { %1472 = vmatmul.f32.gmra.mxu3 %v1228_v46  ;;  %1652 = vmatpush.msra.mxu2 %v3131_v53  ;;  %v1693_v0 = vsub.f32 %v51_v36, %v3131_v53 }
 0x480   :  { %1769 = vmatpush.msrb.mxu1 %v3131_v53 }
 0x481   :  { %v1694_v56 = vand.u32 4294901760, %v1693_v0  ;;  %1736 = vmatpush.msrb.mxu0 %v1693_v0 }
 0x483   :  { %1231 = vmatmul.f32.gmra.mxu0 %v1230_v63  ;;  %1336 = vmatmul.f32.gmra.mxu1 %v1234_v50  ;;  %v1695_v7 = vsub.f32 %v1693_v0, %v1694_v56 }
 0x485   :  { %1407 = vmatmul.f32.gmra.mxu2 %v1235_v47  ;;  %v1653_v47 = vand.u32 4294901760, %v50_v58 }
 0x487   :  { %1478 = vmatmul.f32.gmra.mxu3 %v1236_v4  ;;  %1654 = vmatpush.msra.mxu2 %v1653_v47  ;;  %v1699_v63 = vsub.f32 %v50_v58, %v1653_v47 }
 0x488   :  { %1771 = vmatpush.msrb.mxu1 %v1653_v47 }
 0x489   :  { %v1700_v61 = vand.u32 4294901760, %v1699_v63  ;;  %1739 = vmatpush.msrb.mxu0 %v1699_v63 }
 0x48b   :  { %1239 = vmatmul.f32.gmra.mxu0 %v1238_v52  ;;  %1340 = vmatmul.f32.gmra.mxu1 %v1242_v45 }
 0x48d   :  { %1412 = vmatmul.f32.gmra.mxu2 %v1243_v5  ;;  %v1701_v5 = vsub.f32 %v1699_v63, %v1700_v61 }
 0x48f   :  { %1484 = vmatmul.f32.gmra.mxu3 %v1244_v2  ;;  %v1702_v2 = vand.u32 4294901760, %v1701_v5 }
 0x493   :  { %1247 = vmatmul.f32.gmra.mxu0 %v1246_v13  ;;  %1344 = vmatmul.f32.gmra.mxu1 %v1250_v11 }
 0x495   :  { %1417 = vmatmul.f32.gmra.mxu2 %v1251_v60 }
 0x497   :  { %1490 = vmatmul.f32.gmra.mxu3 %v1252_v3 }
 0x49b   :  { %1255 = vmatmul.f32.gmra.mxu0 %v1254_v14  ;;  %1592 = vmatmul.f32.vlgmr.msra.gmra.mxu1 %v2970_v40 }
 0x4a3   :  { %1535 = vmatmul.f32.vlgmr.msra.gmra.mxu0 %v2970_v40  ;;  %1596 = vmatmul.f32.gmra.mxu1 %v2995_v12 }
 0x4a8   :  { %v1200_v51 = vpop.f32.mrf.mxu0 }
 0x4ab   :  { %1539 = vmatmul.f32.gmra.mxu0 %v2995_v12  ;;  %1600 = vmatmul.f32.gmra.mxu1 %v3029_v43 }
 0x4ae   :  { %v1449_v9 = vpop.f32.mrf.mxu3 }
 0x4b0   :  { %v1208_v54 = vpop.f32.mrf.mxu0 }
 0x4b1   :  { %v1317_v16 = vpop.f32.mrf.mxu1  ;;  %v1383_v42 = vpop.f32.mrf.mxu2 }
 0x4b2   :  { %v3094_v18 = vadd.f32 %v1317_v16, %v1200_v51  ;;  %v1655_v51 = vand.u32 4294901760, %v49_v1 }
 0x4b3   :  { %1543 = vmatmul.f32.gmra.mxu0 %v3029_v43  ;;  %1604 = vmatmul.f32.gmra.mxu1 %v3065_v22 }
 0x4b4   :  { %v1384_v4 = vadd.f32 %v1383_v42, %v3094_v18  ;;  %1656 = vmatpush.msra.mxu2 %v1655_v51  ;;  %1773 = vmatpush.msrb.mxu1 %v1655_v51 }
 0x4b6   :  { %v1450_v6 = vadd.f32 %v1449_v9, %v1384_v4 }
 0x4b7   :  { %v1455_v46 = vpop.f32.mrf.mxu3 }
 0x4b9   :  { %v1321_v8 = vpop.f32.mrf.mxu1  ;;  %v1388_v41 = vpop.f32.mrf.mxu2 }
 0x4ba   :  { %v3098_v20 = vadd.f32 %v1321_v8, %v1208_v54 }
 0x4bb   :  { %1547 = vmatmul.f32.gmra.mxu0 %v3065_v22  ;;  %1608 = vmatmul.f32.gmra.mxu1 %v3067_v27  ;;  %v1688_v22 = vand.u32 4294901760, %v3114_v34 }
 0x4bc   :  { %v1389_v13 = vadd.f32 %v1388_v41, %v3098_v20 }
 0x4bd   :  { %v1689_v62 = vsub.f32 %v3114_v34, %v1688_v22  ;;  %1802 = vmatpush.msrb.mxu2 %v1688_v22 }
 0x4bf   :  { %v1690_v29 = vand.u32 4294901760, %v1689_v62  ;;  %1806 = vmatpush.msrb.mxu2 %v1694_v56 }
 0x4c1   :  { %1691 = vmatpush.msra.mxu3 %v1690_v29  ;;  %1810 = vmatpush.msrb.mxu2 %v1700_v61 }
 0x4c3   :  { %1551 = vmatmul.f32.gmra.mxu0 %v3067_v27  ;;  %1612 = vmatmul.f32.gmra.mxu1 %v1234_v50 }
 0x4cb   :  { %1555 = vmatmul.f32.gmra.mxu0 %v1234_v50  ;;  %1616 = vmatmul.f32.gmra.mxu1 %v1242_v45  ;;  %v1696_v50 = vand.u32 4294901760, %v1695_v7 }
 0x4cd   :  { %1697 = vmatpush.msra.mxu3 %v1696_v50 }
 0x4cf   :  { %1703 = vmatpush.msra.mxu3 %v1702_v2 }
 0x4d3   :  { %1559 = vmatmul.f32.gmra.mxu0 %v1242_v45  ;;  %1620 = vmatmul.f32.gmra.mxu1 %v1250_v11 }
 0x4db   :  { %1563 = vmatmul.f32.gmra.mxu0 %v1250_v11 }
 0x4dd   :  { %v1325_v40 = vpop.f32.mrf.mxu1 }
 0x4e5   :  { %v1216_v12 = vpop.f32.mrf.mxu0  ;;  %v1393_v44 = vpop.f32.mrf.mxu2 }
 0x4e6   :  { %v1326_v43 = vadd.f32 %v1325_v40, %v1216_v12  ;;  %v1705_v40 = vsub.f32 %v49_v1, %v1655_v51  ;;  %v1456_v12 = vadd.f32 %v1455_v46, %v1389_v13 }
 0x4e7   :  { %v1461_v59 = vpop.f32.mrf.mxu3 }
 0x4e8   :  { %v1394_v49 = vadd.f32 %v1393_v44, %v1326_v43  ;;  %1742 = vmatpush.msrb.mxu0 %v1705_v40 }
 0x4ea   :  { %v1462_v11 = vadd.f32 %v1461_v59, %v1394_v49 }
 0x4f0   :  { %v1329_v23 = vpop.f32.mrf.mxu1 }
 0x4f8   :  { %v1224_v26 = vpop.f32.mrf.mxu0  ;;  %v1333_v30 = vpop.f32.mrf.mxu1 }
 0x4f9   :  { %v3103_v25 = vadd.f32 %v1329_v23, %v1224_v26  ;;  %v1398_v45 = vpop.f32.mrf.mxu2  ;;  %v1706_v23 = vand.u32 4294901760, %v1705_v40 }
 0x4fa   :  { %v1467_v52 = vpop.f32.mrf.mxu3 }
 0x4fb   :  { %v1399_v16 = vadd.f32 %v1398_v45, %v3103_v25  ;;  %1814 = vmatpush.msrb.mxu2 %v1706_v23 }
 0x4fd   :  { %v1468_v20 = vadd.f32 %v1467_v52, %v1399_v16 }
 0x500   :  { %v1232_v31 = vpop.f32.mrf.mxu0  ;;  %v1337_v28 = vpop.f32.mrf.mxu1 }
 0x501   :  { %v3105_v37 = vadd.f32 %v1333_v30, %v1232_v31  ;;  %v1403_v8 = vpop.f32.mrf.mxu2 }
 0x502   :  { %v1473_v30 = vpop.f32.mrf.mxu3 }
 0x503   :  { %v1404_v34 = vadd.f32 %v1403_v8, %v3105_v37 }
 0x505   :  { %v1474_v9 = vadd.f32 %v1473_v30, %v1404_v34 }
 0x508   :  { %v1240_v35 = vpop.f32.mrf.mxu0  ;;  %v3117_v19 = vpop.f32.mrf.mxu1 }
 0x509   :  { %v3121_v27 = vadd.f32 %v1337_v28, %v1240_v35  ;;  %v1707_v28 = vsub.f32 %v1705_v40, %v1706_v23  ;;  %v1408_v22 = vpop.f32.mrf.mxu2  ;;  %v3160_v40 = vld [vmem:[%s3230_s1 + $0x20] sm:$0xff] }
 0x50a   :  { %v1479_v0 = vpop.f32.mrf.mxu3 }
 0x50b   :  { %v1708_v25 = vand.u32 4294901760, %v1707_v28  ;;  %v1409_v41 = vadd.f32 %v1408_v22, %v3121_v27 }
 0x50d   :  { %1709 = vmatpush.msra.mxu3 %v1708_v25  ;;  %v1480_v46 = vadd.f32 %v1479_v0, %v1409_v41 }
 0x50f   :  { %1837 = vmatpush.msrb.mxu3 %v3110_v33 }
 0x510   :  { %v3124_v38 = vpop.f32.mrf.mxu0  ;;  %v3126_v39 = vpop.f32.mrf.mxu1 }
 0x511   :  { %1839 = vmatpush.msrb.mxu3 %v3131_v53  ;;  %v1342_v50 = vadd.f32 %v3117_v19, %v3124_v38 }
 0x512   :  { %v1485_v53 = vpop.f32.mrf.mxu3 }
 0x513   :  { %1841 = vmatpush.msrb.mxu3 %v1653_v47 }
 0x515   :  { %1843 = vmatpush.msrb.mxu3 %v1655_v51 }
 0x518   :  { %v3133_v24 = vpop.f32.mrf.mxu0  ;;  %v1593_v48 = vpop.f32.mrf.mxu1 }
 0x519   :  { %v1346_v47 = vadd.f32 %v3126_v39, %v3133_v24 }
 0x51a   :  { %v1491_v5 = vpop.f32.mrf.mxu3 }
 0x520   :  { %v1536_v57 = vpop.f32.mrf.mxu0  ;;  %v1597_v17 = vpop.f32.mrf.mxu1 }
 0x521   :  { %v1537_v21 = vadd.f32 %v1536_v57, %v1450_v6  ;;  %v1413_v57 = vpop.f32.mrf.mxu2 }
 0x522   :  { %v1414_v44 = vadd.f32 %v1413_v57, %v1342_v50 }
 0x523   :  { %v1594_v18 = vadd.f32 %v1593_v48, %v1537_v21 }
 0x528   :  { %v1540_v55 = vpop.f32.mrf.mxu0  ;;  %v1601_v15 = vpop.f32.mrf.mxu1 }
 0x529   :  { %v1541_v26 = vadd.f32 %v1540_v55, %v1456_v12  ;;  %v1486_v55 = vadd.f32 %v1485_v53, %v1414_v44  ;;  %v1418_v4 = vpop.f32.mrf.mxu2  ;;  %v1630_v12 = vperm.slane %v3160_v40, 5 }
 0x52a   :  { %v1419_v45 = vadd.f32 %v1418_v4, %v1346_v47 }
 0x52b   :  { %v1598_v35 = vadd.f32 %v1597_v17, %v1541_v26 }
 0x52c   :  { %v1492_v19 = vadd.f32 %v1491_v5, %v1419_v45  ;;  %v38_v5 = vld [vmem:[%s3230_s1 + $0x10] sm:$0xff] }
 0x530   :  { %v1544_v60 = vpop.f32.mrf.mxu0  ;;  %v1605_v14 = vpop.f32.mrf.mxu1 }
 0x531   :  { %v1545_v3 = vadd.f32 %v1544_v60, %v1462_v11 }
 0x533   :  { %v1602_v54 = vadd.f32 %v1601_v15, %v1545_v3 }
 0x535   :  { %v1624_v43 = vadd.f32 %v1602_v54, %v1594_v18 }
 0x538   :  { %v1548_v31 = vpop.f32.mrf.mxu0  ;;  %v1609_v29 = vpop.f32.mrf.mxu1 }
 0x539   :  { %v1549_v32 = vadd.f32 %v1548_v31, %v1468_v20 }
 0x53b   :  { %v1606_v62 = vadd.f32 %v1605_v14, %v1549_v32 }
 0x53d   :  { %v1625_v42 = vadd.f32 %v1606_v62, %v1598_v35 }
 0x540   :  { %v1552_v36 = vpop.f32.mrf.mxu0  ;;  %v1613_v7 = vpop.f32.mrf.mxu1 }
 0x541   :  { %v1553_v48 = vadd.f32 %v1552_v36, %v1474_v9 }
 0x543   :  { %v1610_v56 = vadd.f32 %v1609_v29, %v1553_v48  ;;  %v2421_v48 = vld [vmem:[#allocation2] sm:$0xff] }
 0x545   :  { %v1626_v37 = vadd.f32 %v1624_v43, %v1610_v56 }
 0x548   :  { %v1556_v33 = vpop.f32.mrf.mxu0  ;;  %v1617_v27 = vpop.f32.mrf.mxu1 }
 0x549   :  { %v1557_v17 = vadd.f32 %v1556_v33, %v1480_v46  ;;  %v2422_v33 = vld [vmem:[#allocation2 + $0x8] sm:$0xff] }
 0x54b   :  { %v1614_v58 = vadd.f32 %v1613_v7, %v1557_v17 }
 0x54d   :  { %v1627_v59 = vadd.f32 %v1625_v42, %v1614_v58 }
 0x550   :  { %v1560_v15 = vpop.f32.mrf.mxu0  ;;  %v1621_v21 = vpop.f32.mrf.mxu1 }
 0x551   :  { %v1561_v63 = vadd.f32 %v1560_v15, %v1486_v55 }
 0x553   :  { %v1618_v61 = vadd.f32 %v1617_v27, %v1561_v63 }
 0x555   :  { %v1628_v49 = vadd.f32 %v1626_v37, %v1618_v61  ;;  %v39_v61 = vld [vmem:[%s3230_s1 + $0x18] sm:$0xff] }
 0x557   :  { %v1632_v38 = vsel %vm53_vm0, %v1628_v49, 0  ;;  %v1924_v49 = vand.u32 4294901760, %v39_v61 }
 0x558   :  { %v1657_v6 = vand.u32 4294901760, %v1632_v38  ;;  %v1564_v52 = vpop.f32.mrf.mxu0 }
 0x559   :  { %v1565_v2 = vadd.f32 %v1564_v52, %v1492_v19  ;;  %1925 = vmatpush.msra.mxu0 %v1924_v49  ;;  %v1962_v19 = vsub.f32 %v39_v61, %v1924_v49 }
 0x55a   :  { %v1658_v11 = vsub.f32 %v1632_v38, %v1657_v6  ;;  %1711 = vmatmul.f32.vlgmr.msra.gmra.mxu3 %v1657_v6  ;;  %v1926_v38 = vand.u32 4294901760, %v38_v5 }
 0x55b   :  { %v1622_v60 = vadd.f32 %v1621_v21, %v1565_v2  ;;  %2042 = vmatpush.msra.mxu3 %v1924_v49  ;;  %v1963_v52 = vand.u32 4294901760, %v1962_v19  ;;  %v36_v21 = vld [vmem:[%s3230_s1] sm:$0xff] }
 0x55c   :  { %v1659_v13 = vand.u32 4294901760, %v1658_v11  ;;  %1745 = vmatmul.f32.vlgmr.msrb.gmra.mxu0 %v1658_v11  ;;  %v1968_v2 = vsub.f32 %v38_v5, %v1926_v38 }
 0x55d   :  { %v1629_v39 = vadd.f32 %v1627_v59, %v1622_v60  ;;  %1927 = vmatpush.msra.mxu0 %v1926_v38  ;;  %2044 = vmatpush.msra.mxu3 %v1926_v38  ;;  %v1964_v60 = vsub.f32 %v1962_v19, %v1963_v52 }
 0x55e   :  { %v1660_v24 = vsub.f32 %v1658_v11, %v1659_v13  ;;  %1777 = vmatmul.f32.vlgmr.msrb.gmra.mxu1 %v1659_v13  ;;  %v1969_v13 = vand.u32 4294901760, %v1968_v2 }
 0x55f   :  { %v1635_v3 = vsel %vm53_vm0, %v1629_v39, 0 }
 0x560   :  { %v1661_v1 = vand.u32 4294901760, %v1660_v24  ;;  %v1665_v14 = vand.u32 4294901760, %v1635_v3  ;;  %v1930_v24 = vand.u32 4294901760, %v36_v21 }
 0x562   :  { %1662 = vmatmul.f32.vlgmr.msra.gmra.mxu2 %v1661_v1  ;;  %1715 = vmatmul.f32.gmra.mxu3 %v1665_v14  ;;  %v1666_v51 = vsub.f32 %v1635_v3, %v1665_v14  ;;  %v1965_v3 = vand.u32 4294901760, %v1964_v60  ;;  %v1970_v1 = vsub.f32 %v1968_v2, %v1969_v13 }
 0x563   :  { %2008 = vmatpush.msra.mxu2 %v1962_v19  ;;  %v44_v19 = vld [vmem:[%s3230_s1 + $0x40] sm:$0xff] }
 0x564   :  { %1750 = vmatmul.f32.gmra.mxu0 %v1666_v51  ;;  %v1667_v16 = vand.u32 4294901760, %v1666_v51  ;;  %1966 = vmatpush.msra.mxu1 %v1965_v3 }
 0x565   :  { %2011 = vmatpush.msra.mxu2 %v1968_v2 }
 0x566   :  { %1783 = vmatmul.f32.gmra.mxu1 %v1667_v16  ;;  %v1668_v18 = vsub.f32 %v1666_v51, %v1667_v16  ;;  %v1980_v51 = vsub.f32 %v36_v21, %v1930_v24  ;;  %v1971_v16 = vand.u32 4294901760, %v1970_v1 }
 0x568   :  { %v1669_v54 = vand.u32 4294901760, %v1668_v18  ;;  %1972 = vmatpush.msra.mxu1 %v1971_v16 }
 0x56a   :  { %1670 = vmatmul.f32.gmra.mxu2 %v1669_v54  ;;  %1845 = vmatmul.f32.vlgmr.msrb.gmra.mxu3 %v1657_v6  ;;  %v1981_v54 = vand.u32 4294901760, %v1980_v51 }
 0x572   :  { %1816 = vmatmul.f32.vlgmr.msrb.gmra.mxu2 %v1657_v6  ;;  %1849 = vmatmul.f32.gmra.mxu3 %v1665_v14  ;;  %v37_v6 = vld [vmem:[%s3230_s1 + $0x8] sm:$0xff] }
 0x573   :  { %v1928_v11 = vand.u32 4294901760, %v37_v6 }
 0x575   :  { %v1974_v39 = vsub.f32 %v37_v6, %v1928_v11  ;;  %1929 = vmatpush.msra.mxu0 %v1928_v11  ;;  %2046 = vmatpush.msra.mxu3 %v1928_v11 }
 0x577   :  { %2014 = vmatpush.msra.mxu2 %v1974_v39  ;;  %1931 = vmatpush.msra.mxu0 %v1930_v24 }
 0x578   :  { %2048 = vmatpush.msra.mxu3 %v1930_v24 }
 0x579   :  { %2077 = vmatpush.msrb.mxu0 %v1963_v52  ;;  %2017 = vmatpush.msra.mxu2 %v1980_v51  ;;  %v43_v52 = vld [vmem:[%s3230_s1 + $0x38] sm:$0xff] }
 0x57a   :  { %1820 = vmatmul.f32.gmra.mxu2 %v1665_v14  ;;  %v1975_v14 = vand.u32 4294901760, %v1974_v39 }
 0x57b   :  { %2081 = vmatpush.msrb.mxu0 %v1969_v13  ;;  %v42_v13 = vld [vmem:[%s3230_s1 + $0x30] sm:$0xff] }
 0x57c   :  { %v1976_v18 = vsub.f32 %v1974_v39, %v1975_v14  ;;  %v2147_v3 = vand.u32 4294901760, %v42_v13 }
 0x57d   :  { %2085 = vmatpush.msrb.mxu0 %v1975_v14 }
 0x57e   :  { %v2193_v14 = vsub.f32 %v42_v13, %v2147_v3 }
 0x57f   :  { %2089 = vmatpush.msrb.mxu0 %v1981_v54 }
 0x5d9   :  { %v1746_v30 = vpop.f32.mrf.mxu0 }
 0x5db   :  { %v1778_v25 = vpop.f32.mrf.mxu1 }
 0x5dd   :  { %v1712_v8 = vpop.f32.mrf.mxu3 }
 0x5e1   :  { %v1751_v22 = vpop.f32.mrf.mxu0 }
 0x5e3   :  { %v1784_v41 = vpop.f32.mrf.mxu1 }
 0x5e5   :  { %v1663_v43 = vpop.f32.mrf.mxu2  ;;  %v1716_v20 = vpop.f32.mrf.mxu3 }
 0x5e6   :  { %v1664_v23 = vadd.f32 %v1663_v43, %v1630_v12 }
 0x5e8   :  { %v1713_v26 = vadd.f32 %v1712_v8, %v1664_v23  ;;  %v1977_v8 = vand.u32 4294901760, %v1976_v18  ;;  %v2194_v18 = vand.u32 4294901760, %v2193_v14 }
 0x5ea   :  { %v1747_v32 = vadd.f32 %v1746_v30, %v1713_v26  ;;  %1978 = vmatpush.msra.mxu1 %v1977_v8  ;;  %v2195_v8 = vsub.f32 %v2193_v14, %v2194_v18 }
 0x5ec   :  { %v1779_v35 = vadd.f32 %v1778_v25, %v1747_v32 }
 0x5ed   :  { %v1671_v31 = vpop.f32.mrf.mxu2  ;;  %v1846_v62 = vpop.f32.mrf.mxu3 }
 0x5ee   :  { %v1672_v28 = vadd.f32 %v1671_v31, %v1630_v12  ;;  %v1982_v12 = vsub.f32 %v1980_v51, %v1981_v54  ;;  %v41_v51 = vld [vmem:[%s3230_s1 + $0x28] sm:$0xff]  ;;  %s2482_s1 = smov [#allocation5]  }
 0x5ef   :  { %v2149_v54 = vand.u32 4294901760, %v41_v51  ;;  %s2355_s13 = sshll.u32 %s2482_s1, 4  ;;  %s2356_s13 = int_to_ptr.vmem [resolvable:$true] %s2355_s13 }
 0x5f0   :  { %v1717_v34 = vadd.f32 %v1716_v20, %v1672_v28  ;;  %v1983_v23 = vand.u32 4294901760, %v1982_v12 }
 0x5f1   :  { %v2199_v12 = vsub.f32 %v41_v51, %v2149_v54 }
 0x5f2   :  { %v1752_v36 = vadd.f32 %v1751_v22, %v1717_v34  ;;  %1984 = vmatpush.msra.mxu1 %v1983_v23 }
 0x5f3   :  { %v2200_v23 = vand.u32 4294901760, %v2199_v12 }
 0x5f4   :  { %v1785_v56 = vadd.f32 %v1784_v41, %v1752_v36  ;;  %2112 = vmatpush.msrb.mxu1 %v1924_v49 }
 0x5f5   :  { %v1817_v29 = vpop.f32.mrf.mxu2  ;;  %v1850_v50 = vpop.f32.mrf.mxu3 }
 0x5f6   :  { %v1818_v42 = vadd.f32 %v1817_v29, %v1779_v35  ;;  %2114 = vmatpush.msrb.mxu1 %v1926_v38  ;;  %v2143_v38 = vand.u32 4294901760, %v44_v19 }
 0x5f8   :  { %v1847_v9 = vadd.f32 %v1846_v62, %v1818_v42  ;;  %2116 = vmatpush.msrb.mxu1 %v1928_v11  ;;  %v2181_v6 = vsub.f32 %v44_v19, %v2143_v38  ;;  %2144 = vmatpush.xpose.msrb.mxu2 %v2143_v38  ;;  %v2145_v11 = vand.u32 4294901760, %v43_v52 }
 0x5fa   :  { %v3163_v0 = vadd.f32 %v2421_v48, %v1847_v9  ;;  %2118 = vmatpush.msrb.mxu1 %v1930_v24  ;;  %v1899_v9 = vperm.slane %v3160_v40, 3  ;;  %v2182_v2 = vand.u32 4294901760, %v2181_v6  ;;  %v2187_v60 = vsub.f32 %v43_v52, %v2145_v11 }
 0x5fc   :  { %v1855_v37 = vsel %vm53_vm0, %v3163_v0, 0.0  ;;  %v2183_v21 = vsub.f32 %v2181_v6, %v2182_v2  ;;  %2146 = vmatpush.xpose.msrb.mxu2 %v2145_v11  ;;  %v2188_v24 = vand.u32 4294901760, %v2187_v60 }
 0x5fd   :  { %v1821_v7 = vpop.f32.mrf.mxu2  ;;  %1856 = vadd.xlane.f32.xlu2 %v1855_v37 }
 0x5fe   :  { %v1822_v46 = vadd.f32 %v1821_v7, %v1785_v56  ;;  %v2184_v39 = vand.u32 4294901760, %v2183_v21  ;;  %v2189_v1 = vsub.f32 %v2187_v60, %v2188_v24 }
 0x600   :  { %v1851_v57 = vadd.f32 %v1850_v50, %v1822_v46  ;;  %2185 = vmatpush.xpose.msrb.mxu3 %v2184_v39  ;;  %2148 = vmatpush.xpose.msrb.mxu2 %v2147_v3  ;;  %v2190_v16 = vand.u32 4294901760, %v2189_v1 }
 0x602   :  { %v3167_v17 = vadd.f32 %v2422_v33, %v1851_v57 }
 0x604   :  { %v1858_v44 = vsel %vm53_vm0, %v3167_v17, 0.0  ;;  %2191 = vmatpush.xpose.msrb.mxu3 %v2190_v16  ;;  %2150 = vmatpush.xpose.msrb.mxu2 %v2149_v54 }
 0x605   :  { %1859 = vadd.xlane.f32.xlu1 %v1858_v44 }
 0x670   :  { %v1857_v58 = vpop.xlane.xlu2 %1856 }
 0x671   :  { %v1861_v53 = vmul.f32 %v1857_v58, %v2516_v10 }
 0x673   :  { %v3173_v59 = vsub.f32 %v3163_v0, %v1861_v53 }
 0x675   :  { %v1865_v55 = vmul.f32 %v3173_v59, %v3173_v59 }
 0x677   :  { %v1867_v47 = vsel %vm53_vm0, %v1865_v55, 0.0 }
 0x678   :  { %1868 = vadd.xlane.f32.xlu0 %v1867_v47  ;;  %v1860_v27 = vpop.xlane.xlu1 %1859 }
 0x679   :  { %v1862_v15 = vmul.f32 %v1860_v27, %v2516_v10 }
 0x67b   :  { %v3180_v63 = vsub.f32 %v3167_v17, %v1862_v15 }
 0x67d   :  { %v1866_v4 = vmul.f32 %v3180_v63, %v3180_v63 }
 0x67f   :  { %v1870_v45 = vsel %vm53_vm0, %v1866_v4, 0.0 }
 0x680   :  { %1871 = vadd.xlane.f32.xlu2 %v1870_v45 }
 0x6eb   :  { %v1869_v43 = vpop.xlane.xlu0 %1868 }
 0x6ec   :  { %v1873_v20 = vmul.f32 %v1869_v43, %v2516_v10  ;;  %v2196_v43 = vand.u32 4294901760, %v2195_v8 }
 0x6ee   :  { %v1875_v26 = vadd.f32 1e-05, %v1873_v20  ;;  %2197 = vmatpush.xpose.msrb.mxu3 %v2196_v43  ;;  %v2201_v20 = vsub.f32 %v2199_v12, %v2200_v23 }
 0x6f0   :  { %2416 = vrsqrt.f32 %v1875_v26  ;;  %vm1883_vm13 = vweird.f32 %v1875_v26 }
 0x6f3   :  { %v1872_v30 = vpop.xlane.xlu2 %1871 }
 0x6f4   :  { %v1874_v31 = vmul.f32 %v1872_v30, %v2516_v10  ;;  %v1902_v10 = vperm.slane %v3160_v40, 4 }
 0x6f6   :  { %v2417_v28 = vpop.eup %2416  ;;  %v1876_v32 = vadd.f32 1e-05, %v1874_v31  ;;  %v1905_v31 = vperm.slane %v3160_v40, 0 }
 0x6f7   :  { %v1878_v25 = vmul.f32 %v2417_v28, %v1875_v26  ;;  %vm1884_vm8 = vweird.f32 %v2417_v28  ;;  %v2202_v26 = vand.u32 4294901760, %v2201_v20 }
 0x6f8   :  { %2418 = vrsqrt.f32 %v1876_v32  ;;  %vm1885_vm14 = vmor %vm1883_vm13, %vm1884_vm8  ;;  %vm1893_vm1 = vweird.f32 %v1876_v32 }
 0x6f9   :  { %v1879_v34 = vmul.f32 %v2417_v28, %v1878_v25  ;;  %2203 = vmatpush.xpose.msrb.mxu3 %v2202_v26 }
 0x6fb   :  { %v1880_v35 = vmul.f32 0.5, %v1879_v34 }
 0x6fd   :  { %v1881_v62 = vsub.f32 1.5, %v1880_v35 }
 0x6fe   :  { %v2419_v29 = vpop.eup %2418 }
 0x6ff   :  { %v1882_v42 = vmul.f32 %v2417_v28, %v1881_v62  ;;  %v1888_v22 = vmul.f32 %v2419_v29, %v1876_v32  ;;  %vm1894_vm15 = vweird.f32 %v2419_v29 }
 0x700   :  { %vm1895_vm2 = vmor %vm1893_vm1, %vm1894_vm15 }
 0x701   :  { %v1886_v36 = vsel %vm1885_vm14, %v2417_v28, %v1882_v42  ;;  %v1889_v48 = vmul.f32 %v2419_v29, %v1888_v22 }
 0x702   :  { %v1897_v41 = vmul.f32 %v1886_v36, %v3173_v59 }
 0x703   :  { %v1890_v56 = vmul.f32 0.5, %v1889_v48 }
 0x704   :  { %v1900_v37 = vmul.f32 %v1899_v9, %v1897_v41 }
 0x705   :  { %v1891_v7 = vsub.f32 1.5, %v1890_v56 }
 0x706   :  { %v1903_v46 = vadd.f32 %v1902_v10, %v1900_v37 }
 0x707   :  { %v1892_v50 = vmul.f32 %v2419_v29, %v1891_v7 }
 0x708   :  { %v1907_v57 = vsel %vm53_vm0, %v1903_v46, 0 }
 0x709   :  { %v1896_v33 = vsel %vm1895_vm2, %v2419_v29, %v1892_v50  ;;  %v1932_v44 = vand.u32 4294901760, %v1907_v57 }
 0x70a   :  { %v1898_v58 = vmul.f32 %v1896_v33, %v3180_v63 }
 0x70b   :  { %1986 = vmatmul.f32.vlgmr.msra.gmra.mxu1 %v1932_v44  ;;  %v1933_v53 = vsub.f32 %v1907_v57, %v1932_v44 }
 0x70c   :  { %v1901_v55 = vmul.f32 %v1899_v9, %v1898_v58  ;;  %2261 = vmatpush.xpose.msra.mxu1 %v2143_v38 }
 0x70d   :  { %2020 = vmatmul.f32.vlgmr.msra.gmra.mxu2 %v1933_v53  ;;  %v1934_v47 = vand.u32 4294901760, %v1933_v53 }
 0x70e   :  { %v1904_v59 = vadd.f32 %v1902_v10, %v1901_v55  ;;  %2296 = vmatpush.xpose.msra.mxu2 %v2182_v2 }
 0x70f   :  { %2052 = vmatmul.f32.vlgmr.msra.gmra.mxu3 %v1934_v47  ;;  %v1935_v27 = vsub.f32 %v1933_v53, %v1934_v47 }
 0x710   :  { %v1910_v15 = vsel %vm53_vm0, %v1904_v59, 0  ;;  %2263 = vmatpush.xpose.msra.mxu1 %v2145_v11  ;;  %2331 = vmatpush.xpose.msra.mxu3 %v2143_v38  ;;  %v2130_v38 = vperm.slane %v3160_v40, 6 }
 0x711   :  { %v1936_v4 = vand.u32 4294901760, %v1935_v27  ;;  %v1940_v45 = vand.u32 4294901760, %v1910_v15 }
 0x712   :  { %2300 = vmatpush.xpose.msra.mxu2 %v2188_v24 }
 0x713   :  { %1937 = vmatmul.f32.vlgmr.msra.gmra.mxu0 %v1936_v4  ;;  %1990 = vmatmul.f32.gmra.mxu1 %v1940_v45  ;;  %v1941_v61 = vsub.f32 %v1910_v15, %v1940_v45 }
 0x714   :  { %2227 = vmatpush.xpose.msra.mxu0 %v2181_v6  ;;  %2265 = vmatpush.xpose.msra.mxu1 %v2147_v3 }
 0x715   :  { %2025 = vmatmul.f32.gmra.mxu2 %v1941_v61  ;;  %v1942_v49 = vand.u32 4294901760, %v1941_v61  ;;  %2333 = vmatpush.xpose.msra.mxu3 %v2145_v11 }
 0x716   :  { %2304 = vmatpush.xpose.msra.mxu2 %v2194_v18 }
 0x717   :  { %2058 = vmatmul.f32.gmra.mxu3 %v1942_v49  ;;  %v1943_v5 = vsub.f32 %v1941_v61, %v1942_v49 }
 0x718   :  { %2230 = vmatpush.xpose.msra.mxu0 %v2187_v60  ;;  %2267 = vmatpush.xpose.msra.mxu1 %v2149_v54 }
 0x719   :  { %v1944_v63 = vand.u32 4294901760, %v1943_v5  ;;  %2335 = vmatpush.xpose.msra.mxu3 %v2147_v3 }
 0x71a   :  { %2308 = vmatpush.xpose.msra.mxu2 %v2200_v23 }
 0x71b   :  { %1945 = vmatmul.f32.gmra.mxu0 %v1944_v63  ;;  %2120 = vmatmul.f32.vlgmr.msrb.gmra.mxu1 %v1932_v44 }
 0x71c   :  { %2233 = vmatpush.xpose.msra.mxu0 %v2193_v14 }
 0x71d   :  { %2337 = vmatpush.xpose.msra.mxu3 %v2149_v54 }
 0x720   :  { %2236 = vmatpush.xpose.msra.mxu0 %v2199_v12 }
 0x723   :  { %2091 = vmatmul.f32.vlgmr.msrb.gmra.mxu0 %v1932_v44  ;;  %2124 = vmatmul.f32.gmra.mxu1 %v1940_v45 }
 0x72b   :  { %2095 = vmatmul.f32.gmra.mxu0 %v1940_v45 }
 0x788   :  { %v1987_v30 = vpop.f32.mrf.mxu1 }
 0x790   :  { %v1938_v28 = vpop.f32.mrf.mxu0  ;;  %v1991_v25 = vpop.f32.mrf.mxu1 }
 0x791   :  { %v1939_v32 = vadd.f32 %v1938_v28, %v1905_v31  ;;  %v2021_v35 = vpop.f32.mrf.mxu2 }
 0x792   :  { %v2053_v22 = vpop.f32.mrf.mxu3 }
 0x793   :  { %v1988_v34 = vadd.f32 %v1987_v30, %v1939_v32 }
 0x795   :  { %v2022_v29 = vadd.f32 %v2021_v35, %v1988_v34 }
 0x797   :  { %v2054_v9 = vadd.f32 %v2053_v22, %v2022_v29 }
 0x798   :  { %v1946_v62 = vpop.f32.mrf.mxu0  ;;  %v2121_v48 = vpop.f32.mrf.mxu1 }
 0x799   :  { %v1947_v42 = vadd.f32 %v1946_v62, %v1905_v31  ;;  %v2026_v56 = vpop.f32.mrf.mxu2 }
 0x79a   :  { %v2059_v50 = vpop.f32.mrf.mxu3 }
 0x79b   :  { %v1992_v36 = vadd.f32 %v1991_v25, %v1947_v42 }
 0x79d   :  { %v2027_v37 = vadd.f32 %v2026_v56, %v1992_v36 }
 0x79f   :  { %v2060_v57 = vadd.f32 %v2059_v50, %v2027_v37 }
 0x7a0   :  { %v2092_v10 = vpop.f32.mrf.mxu0  ;;  %v2125_v55 = vpop.f32.mrf.mxu1 }
 0x7a1   :  { %v2093_v41 = vadd.f32 %v2092_v10, %v2054_v9 }
 0x7a3   :  { %v2122_v7 = vadd.f32 %v2121_v48, %v2093_v41 }
 0x7a5   :  { %v2128_v46 = vmax.f32 %v2122_v7, 0.0 }
 0x7a7   :  { %v2151_v33 = vand.u32 4294901760, %v2128_v46 }
 0x7a8   :  { %v2096_v44 = vpop.f32.mrf.mxu0 }
 0x7a9   :  { %v2152_v58 = vsub.f32 %v2128_v46, %v2151_v33  ;;  %v2097_v53 = vadd.f32 %v2096_v44, %v2060_v57  ;;  %2205 = vmatmul.f32.vlgmr.msrb.gmra.mxu3 %v2151_v33 }
 0x7ab   :  { %v2153_v47 = vand.u32 4294901760, %v2152_v58  ;;  %v2126_v59 = vadd.f32 %v2125_v55, %v2097_v53  ;;  %2239 = vmatmul.f32.vlgmr.msra.gmra.mxu0 %v2152_v58 }
 0x7ad   :  { %v2154_v27 = vsub.f32 %v2152_v58, %v2153_v47  ;;  %v2129_v15 = vmax.f32 %v2126_v59, 0.0  ;;  %2271 = vmatmul.f32.vlgmr.msra.gmra.mxu1 %v2153_v47 }
 0x7af   :  { %v2155_v4 = vand.u32 4294901760, %v2154_v27  ;;  %v2159_v45 = vand.u32 4294901760, %v2129_v15 }
 0x7b1   :  { %2156 = vmatmul.f32.vlgmr.msrb.gmra.mxu2 %v2155_v4  ;;  %2209 = vmatmul.f32.gmra.mxu3 %v2159_v45  ;;  %v2160_v61 = vsub.f32 %v2129_v15, %v2159_v45 }
 0x7b3   :  { %2244 = vmatmul.f32.gmra.mxu0 %v2160_v61  ;;  %v2161_v49 = vand.u32 4294901760, %v2160_v61 }
 0x7b5   :  { %2277 = vmatmul.f32.gmra.mxu1 %v2161_v49  ;;  %v2162_v5 = vsub.f32 %v2160_v61, %v2161_v49 }
 0x7b7   :  { %v2163_v63 = vand.u32 4294901760, %v2162_v5 }
 0x7b9   :  { %2164 = vmatmul.f32.gmra.mxu2 %v2163_v63  ;;  %2339 = vmatmul.f32.vlgmr.msra.gmra.mxu3 %v2151_v33 }
 0x7c1   :  { %2310 = vmatmul.f32.vlgmr.msra.gmra.mxu2 %v2151_v33  ;;  %2343 = vmatmul.f32.gmra.mxu3 %v2159_v45 }
 0x7c9   :  { %2314 = vmatmul.f32.gmra.mxu2 %v2159_v45 }
 0x828   :  { %v2240_v21 = vpop.f32.mrf.mxu0 }
 0x82a   :  { %v2272_v24 = vpop.f32.mrf.mxu1 }
 0x82c   :  { %v2206_v19 = vpop.f32.mrf.mxu3 }
 0x830   :  { %v2245_v18 = vpop.f32.mrf.mxu0 }
 0x832   :  { %v2278_v40 = vpop.f32.mrf.mxu1 }
 0x834   :  { %v2157_v6 = vpop.f32.mrf.mxu2  ;;  %v2210_v2 = vpop.f32.mrf.mxu3 }
 0x835   :  { %v2158_v52 = vadd.f32 %v2157_v6, %v2130_v38 }
 0x837   :  { %v2207_v11 = vadd.f32 %v2206_v19, %v2158_v52 }
 0x839   :  { %v2241_v39 = vadd.f32 %v2240_v21, %v2207_v11 }
 0x83b   :  { %v2273_v1 = vadd.f32 %v2272_v24, %v2241_v39 }
 0x83c   :  { %v2165_v60 = vpop.f32.mrf.mxu2  ;;  %v2340_v14 = vpop.f32.mrf.mxu3 }
 0x83d   :  { %v2166_v13 = vadd.f32 %v2165_v60, %v2130_v38 }
 0x83f   :  { %v2211_v3 = vadd.f32 %v2210_v2, %v2166_v13 }
 0x841   :  { %v2246_v8 = vadd.f32 %v2245_v18, %v2211_v3 }
 0x843   :  { %v2279_v43 = vadd.f32 %v2278_v40, %v2246_v8 }
 0x844   :  { %v2311_v51 = vpop.f32.mrf.mxu2  ;;  %v2344_v26 = vpop.f32.mrf.mxu3 }
 0x845   :  { %v2312_v16 = vadd.f32 %v2311_v51, %v2273_v1 }
 0x847   :  { %v2341_v54 = vadd.f32 %v2340_v14, %v2312_v16 }
 0x849   :  { %v2347_v12 = vadd.f32 %v2341_v54, %v3163_v0 }
 0x84b   :  { %2349 = vst.msk [vmem:[#allocation5] sm:$0xff] %vm53_vm0, %v2347_v12 }
 0x84c   :  { %v2315_v23 = vpop.f32.mrf.mxu2 }
 0x84d   :  { %v2316_v20 = vadd.f32 %v2315_v23, %v2279_v43 }
 0x84f   :  { %v2345_v30 = vadd.f32 %v2344_v26, %v2316_v20 }
 0x851   :  { %v2348_v31 = vadd.f32 %v2345_v30, %v3167_v17 }
 0x853   :  { %2350 = vst.msk [vmem:[#allocation5 + $0x8] sm:$0xff] %vm53_vm0, %v2348_v31 }
 0x854   :  { %2363 = dma.vmem_to_hbm [thread:$0]  %s2356_s13, 256, %s2358_s15, [#allocation4], %s2476_s20, %s2476_s20, %s2477_s21  }
 0x855   :  { %2473 = dma.done.wait [#allocation4], 256  }
 0x856   :  { %2474 = vsyncadd [#allocation4], 4294967040 }
 0x857   :  { %2368 = vsyncpa [#allocation3], 1 }
 0x858   :  { %2369 = vsyncpa [#allocation4], 1 }

</bundles_post_ra>
